<compile_context>
chip_gen: v6e
topology: v6e:2x2x1
jax: 0.10.0
libtpu: 0.0.40
codegen_flags: <defaults>
</compile_context>

<pallas_src>
import numpy as np
import jax
import jax.numpy as jnp
from jax.experimental import pallas as pl
from jax.experimental.pallas import tpu as pltpu


LANE = 128     # lane padding for every feature dimension
K_TILE = 512   # adjacency-column (reduction) tile for the GraphConv kernel


def _round_up(n, m):
    return ((n + m - 1) // m) * m


def _pick_row_tile():
    """256-row tiles on v6e/v7x (2x256 MXU, 2 TCs), 128 on v5e / older."""
    try:
        kind = jax.devices()[0].device_kind.lower()
    except Exception:
        return 128
    if "v6" in kind or "v7" in kind:
        return 256
    return 128


def xavier_normal(key, shape, gain):
    # shape = (fan_out, fan_in), torch.nn.Linear.weight convention
    fan_out, fan_in = shape
    std = gain * float(np.sqrt(2.0 / (fan_in + fan_out)))
    return std * jax.random.normal(key, shape, dtype=jnp.float32)


# ---------------------------------------------------------------------------
# Kernel 1: grouped per-node-type Linear (scalar-prefetch weight selection)
# ---------------------------------------------------------------------------
def _grouped_linear_kernel(tid_ref, x_ref, w_ref, b_ref, o_ref):
    # tid_ref: SMEM (num_tiles,)  x_ref: (TM, kp)  w_ref: (1, kp, hp)
    # b_ref: (1, 1, hp)           o_ref: (TM, hp) bf16
    del tid_ref
    acc = jnp.dot(x_ref[...], w_ref[0], preferred_element_type=jnp.float32)
    o_ref[...] = (acc + b_ref[0]).astype(o_ref.dtype)


def grouped_linear(tile_type_ids, x_pad, w_all, b_all, tm):
    n_pad, kp = x_pad.shape
    hp = w_all.shape[-1]
    return pl.pallas_call(
        _grouped_linear_kernel,
        out_shape=jax.ShapeDtypeStruct((n_pad, hp), jnp.bfloat16),
        grid_spec=pltpu.PrefetchScalarGridSpec(
            num_scalar_prefetch=1,
            grid=(n_pad // tm,),
            in_specs=[
                pl.BlockSpec((tm, kp), lambda i, tid: (i, 0)),
                pl.BlockSpec((1, kp, hp), lambda i, tid: (tid[i], 0, 0)),
                pl.BlockSpec((1, 1, hp), lambda i, tid: (tid[i], 0, 0)),
            ],
            out_specs=pl.BlockSpec((tm, hp), lambda i, tid: (i, 0)),
        ),
        compiler_params=pltpu.CompilerParams(
            dimension_semantics=("parallel",)),
    )(tile_type_ids, x_pad, w_all, b_all)


# ---------------------------------------------------------------------------
# Kernel 2: fused GraphConv layer  y = relu(A_hat @ h [@ W] + b)
#   K-tiled over adjacency columns, f32 VMEM accumulator (P3 pattern).
# ---------------------------------------------------------------------------
def _gcn_layer_weighted_kernel(adj_ref, h_ref, w_ref, b_ref, o_ref, acc_ref):
    k = pl.program_id(1)

    @pl.when(k == 0)
    def _():
        acc_ref[...] = jnp.zeros_like(acc_ref)

    acc_ref[...] += jnp.dot(adj_ref[...], h_ref[...],
                            preferred_element_type=jnp.float32)

    @pl.when(k == pl.num_programs(1) - 1)
    def _():
        # cast accumulator to bf16 so the 2nd dot runs the fast bf16 MXU path
        agg = acc_ref[...].astype(jnp.bfloat16)
        y = jnp.dot(agg, w_ref[...],
                    preferred_element_type=jnp.float32) + b_ref[...]
        o_ref[...] = jnp.maximum(y, 0.0).astype(o_ref.dtype)


def _gcn_layer_noweight_kernel(adj_ref, h_ref, b_ref, o_ref, acc_ref):
    k = pl.program_id(1)

    @pl.when(k == 0)
    def _():
        acc_ref[...] = jnp.zeros_like(acc_ref)

    acc_ref[...] += jnp.dot(adj_ref[...], h_ref[...],
                            preferred_element_type=jnp.float32)

    @pl.when(k == pl.num_programs(1) - 1)
    def _():
        o_ref[...] = jnp.maximum(acc_ref[...] + b_ref[...], 0.0
                                 ).astype(o_ref.dtype)


def gcn_layer(a_hat_pad, h, w_pad, b_pad, tm, tk):
    n_pad = a_hat_pad.shape[0]
    hp = h.shape[1]
    grid = (n_pad // tm, n_pad // tk)

    # Bounded VMEM, independent of n_pad: double-buffered bf16 tiles + f32 acc.
    vmem_bytes = 2 * (tm * tk * 2 + tk * hp * 2 + hp * hp * 2 + tm * hp * 2) \
        + tm * hp * 4 + (4 << 20)
    vmem_bytes = int(min(max(vmem_bytes, 8 << 20), 32 << 20))

    if w_pad is None:
        kernel = _gcn_layer_noweight_kernel
        in_specs = [
            pl.BlockSpec((tm, tk), lambda i, k: (i, k)),   # adjacency stream
            pl.BlockSpec((tk, hp), lambda i, k: (k, 0)),   # H rows for this k
            pl.BlockSpec((1, hp), lambda i, k: (0, 0)),
        ]
        args = (a_hat_pad, h, b_pad)
    else:
        kernel = _gcn_layer_weighted_kernel
        in_specs = [
            pl.BlockSpec((tm, tk), lambda i, k: (i, k)),
            pl.BlockSpec((tk, hp), lambda i, k: (k, 0)),
            pl.BlockSpec((hp, hp), lambda i, k: (0, 0)),
            pl.BlockSpec((1, hp), lambda i, k: (0, 0)),
        ]
        args = (a_hat_pad, h, w_pad, b_pad)

    # TODO(synk): if profiling shows exposed adjacency DMA, add
    #             pipeline_mode=pl.Buffered(3) on the adjacency BlockSpec.
    return pl.pallas_call(
        kernel,
        out_shape=jax.ShapeDtypeStruct((n_pad, hp), jnp.bfloat16),
        grid_spec=pltpu.PrefetchScalarGridSpec(
            num_scalar_prefetch=0,
            grid=grid,
            in_specs=in_specs,
            out_specs=pl.BlockSpec((tm, hp), lambda i, k: (i, 0)),
            scratch_shapes=[pltpu.VMEM((tm, hp), jnp.float32)],
        ),
        compiler_params=pltpu.CompilerParams(
            dimension_semantics=("parallel", "arbitrary"),
            vmem_limit_bytes=vmem_bytes),
    )(*args)


# ---------------------------------------------------------------------------
# Kernel 3: plain Linear (predict head), weight pre-transposed & padded (bf16)
# ---------------------------------------------------------------------------
def _linear_kernel(x_ref, wt_ref, b_ref, o_ref):
    acc = jnp.dot(x_ref[...], wt_ref[...], preferred_element_type=jnp.float32)
    o_ref[...] = (acc + b_ref[...]).astype(o_ref.dtype)


def linear(x, wt_pad, b_pad, tm):
    n, k = x.shape
    m = wt_pad.shape[1]
    return pl.pallas_call(
        _linear_kernel,
        out_shape=jax.ShapeDtypeStruct((n, m), jnp.float32),
        grid_spec=pltpu.PrefetchScalarGridSpec(
            num_scalar_prefetch=0,
            grid=(n // tm,),
            in_specs=[
                pl.BlockSpec((tm, k), lambda i: (i, 0)),
                pl.BlockSpec((k, m), lambda i: (0, 0)),
                pl.BlockSpec((1, m), lambda i: (0, 0)),
            ],
            out_specs=pl.BlockSpec((tm, m), lambda i: (i, 0)),
        ),
        compiler_params=pltpu.CompilerParams(
            dimension_semantics=("parallel",)),
    )(x, wt_pad, b_pad)


# ---------------------------------------------------------------------------
# Model
# ---------------------------------------------------------------------------
class GCNPallas:
    """Pallas-TPU port of GCN.forward ('GCN' branch), eval mode, ReLU.

    `in_dims` must match the insertion order of the feature dict (same
    contract as the PyTorch reference, which zips fc_list with dict values).
    forward(x_dict, a_hat) takes the dense normalized adjacency over the
    concatenated (unpadded) node order; all padding is handled internally.
    """

    def __init__(self, in_dims, num_hidden, num_classes, num_layers, dropout, key):
        self.in_dims = list(in_dims)
        self.num_hidden = num_hidden
        self.num_classes = num_classes
        self.num_layers = num_layers
        self.dropout = dropout  # eval mode -> identity

        self.tm = _pick_row_tile()
        self.kp = _round_up(max(self.in_dims), LANE)
        self.hp = _round_up(num_hidden, LANE)
        self.cp = _round_up(num_classes, LANE)
        kp, hp, cp = self.kp, self.hp, self.cp

        # --- per-type fc (torch Linear semantics y = x @ W.T + b) ---
        self.fc_w, self.fc_b = [], []
        w_all, b_all = [], []
        for in_dim in self.in_dims:
            key, kw, kb = jax.random.split(key, 3)
            w = xavier_normal(kw, (num_hidden, in_dim), gain=1.414)
            bound = 1.0 / float(np.sqrt(in_dim))
            b = jax.random.uniform(kb, (num_hidden,), minval=-bound,
                                   maxval=bound, dtype=jnp.float32)
            self.fc_w.append(w)
            self.fc_b.append(b)
            # pre-transpose + zero-pad once at init
            wt_pad = jnp.zeros((kp, hp), jnp.float32
                               ).at[:in_dim, :num_hidden].set(w.T)
            bp = jnp.zeros((1, hp), jnp.float32).at[0, :num_hidden].set(b)
            w_all.append(wt_pad)
            b_all.append(bp)
        self.fc_wt_all = jnp.stack(w_all)          # (T, kp, hp) f32
        self.fc_b_all = jnp.stack(b_all)           # (T, 1, hp)  f32

        # --- GraphConv layers: layer 0 weight=False; bias init zeros (DGL) ---
        self.gc_w, self.gc_b = [], []
        self.gc_w_pad, self.gc_b_pad = [], []
        for layer in range(num_layers):
            key, kw = jax.random.split(key)
            if layer == 0:
                w, w_pad = None, None
            else:
                w = xavier_normal(kw, (num_hidden, num_hidden), gain=1.0)
                w_pad = jnp.zeros((hp, hp), jnp.float32
                                  ).at[:num_hidden, :num_hidden].set(w
                                  ).astype(jnp.bfloat16)
            b = jnp.zeros((num_hidden,), jnp.float32)
            b_pad = jnp.zeros((1, hp), jnp.float32).at[0, :num_hidden].set(b)
            self.gc_w.append(w)
            self.gc_b.append(b)
            self.gc_w_pad.append(w_pad)
            self.gc_b_pad.append(b_pad)

        # --- predict head ---
        key, kw, kb = jax.random.split(key, 3)
        wp = xavier_normal(kw, (num_classes, num_hidden), gain=1.0)
        bound = 1.0 / float(np.sqrt(num_hidden))
        bpred = jax.random.uniform(kb, (num_classes,), minval=-bound,
                                   maxval=bound, dtype=jnp.float32)
        self.pred_w, self.pred_b = wp, bpred
        self.pred_wt_pad = jnp.zeros((hp, cp), jnp.float32
                                     ).at[:num_hidden, :num_classes].set(wp.T
                                     ).astype(jnp.bfloat16)
        self.pred_b_pad = jnp.zeros((1, cp), jnp.float32
                                    ).at[0, :num_classes].set(bpred)

        # Single jit over the whole padded forward.
        self._fwd = jax.jit(self._forward_padded)

    def _forward_padded(self, x_pad, a_hat_pad_bf16, tile_type_ids):
        h = grouped_linear(tile_type_ids, x_pad, self.fc_wt_all,
                           self.fc_b_all, self.tm)               # bf16
        for w_pad, b_pad in zip(self.gc_w_pad, self.gc_b_pad):
            # TODO(synk): training-mode dropout would go here (identity in eval).
            h = gcn_layer(a_hat_pad_bf16, h, w_pad, b_pad, self.tm, K_TILE)
        return linear(h, self.pred_wt_pad, self.pred_b_pad, self.tm)

    def forward(self, x_dict, a_hat):
        node_counts = [int(v.shape[0]) for v in x_dict.values()]
        pad_counts = [_round_up(n, self.tm) for n in node_counts]
        offsets = np.cumsum([0] + pad_counts[:-1])
        n1 = int(sum(pad_counts))
        n_pad = _round_up(n1, K_TILE)   # K_TILE is a multiple of tm

        # Zero-pad each type to (pad_n, kp), concat, pad total rows to n_pad.
        x_blocks = []
        for feat, pad_n in zip(x_dict.values(), pad_counts):
            n, d = feat.shape
            x_blocks.append(jnp.pad(feat.astype(jnp.float32),
                                    ((0, pad_n - n), (0, self.kp - d))))
        x_pad = jnp.concatenate(x_blocks, axis=0)
        if n_pad > n1:
            x_pad = jnp.pad(x_pad, ((0, n_pad - n1), (0, 0)))

        # Per-row-tile node-type ids (extra total-padding tiles -> type 0;
        # their adjacency columns are zero so they never reach real outputs).
        tile_ids = np.repeat(np.arange(len(node_counts)),
                             np.asarray(pad_counts) // self.tm)
        tile_ids = np.pad(tile_ids, (0, n_pad // self.tm - tile_ids.shape[0]))
        tile_ids = jnp.asarray(tile_ids, dtype=jnp.int32)

        # Scatter the normalized adjacency into the padded node-index space.
        pad_idx = np.concatenate([np.arange(n) + int(off)
                                  for n, off in zip(node_counts, offsets)])
        a_hat_pad = jnp.zeros((n_pad, n_pad), jnp.float32).at[
            pad_idx[:, None], pad_idx[None, :]].set(a_hat)
        a_hat_pad = a_hat_pad.astype(jnp.bfloat16)   # halves O(N^2) HBM bytes

        out_pad = self._fwd(x_pad, a_hat_pad, tile_ids)

        res = {}
        for key_name, n, off in zip(x_dict.keys(), node_counts, offsets):
            res[key_name] = out_pad[int(off):int(off) + n, :self.num_classes]
        return res


# ---------------------------------------------------------------------------
# Demo / correctness check
# ---------------------------------------------------------------------------
if __name__ == "__main__":
    root = jax.random.PRNGKey(0)
    k0, k1, ke1, ke2, kparam = jax.random.split(root, 5)

    in_dims = [16, 24]
    num_hidden = 32
    num_classes = 8
    num_layers = 2
    node_counts = [50, 70]          # deliberately NOT tile multiples

    x_dict = {
        "type_a": jax.random.normal(k0, (node_counts[0], in_dims[0]),
                                    dtype=jnp.float32),
        "type_b": jax.random.normal(k1, (node_counts[1], in_dims[1]),
                                    dtype=jnp.float32),
    }

    # Small random directed graph over the concatenated node set.
    n_total = sum(node_counts)
    num_edges = 400
    src = jax.random.randint(ke1, (num_edges,), 0, n_total)
    dst = jax.random.randint(ke2, (num_edges,), 0, n_total)
    A = jnp.zeros((n_total, n_total), jnp.float32).at[dst, src].set(1.0)
    out_deg = jnp.maximum(A.sum(axis=0), 1.0)     # per-source (DGL clamp min=1)
    in_deg = jnp.maximum(A.sum(axis=1), 1.0)      # per-destination
    a_hat = (in_deg ** -0.5)[:, None] * A * (out_deg ** -0.5)[None, :]

    model = GCNPallas(in_dims, num_hidden, num_classes, num_layers,
                      dropout=0.5, key=kparam)
    out = model.forward(x_dict, a_hat)
    jax.block_until_ready(out)

    # ---- plain-JAX f32 reference of the 'GCN' branch (eval mode, ReLU) ----
    hi = jax.lax.Precision.HIGHEST
    h_list = []
    for feat, w, b in zip(x_dict.values(), model.fc_w, model.fc_b):
        h_list.append(jnp.dot(feat, w.T, precision=hi) + b)
    h = jnp.concatenate(h_list, axis=0)
    for w, b in zip(model.gc_w, model.gc_b):
        h = jnp.dot(a_hat, h, precision=hi)
        if w is not None:
            h = jnp.dot(h, w, precision=hi)
        h = jnp.maximum(h + b, 0.0)
    h = jnp.dot(h, model.pred_w.T, precision=hi) + model.pred_b

    starts = np.cumsum([0] + node_counts[:-1])
    for key_name, off, n in zip(x_dict.keys(), starts, node_counts):
        ref = h[int(off):int(off) + n]
        got = out[key_name]
        assert got.shape == (n, num_classes), key_name
        # bf16 adjacency/activations/weights -> compare with a bf16-level bar
        err = float(jnp.max(jnp.abs(got - ref)))
        scale = float(jnp.max(jnp.abs(ref))) + 1e-6
        assert err / scale < 5e-2, (key_name, err, scale)

    print("KERNEL_OK")
</pallas_src>

<mosaic_0001>
module attributes {stable_mosaic.version = 11 : i64} {
  func.func @_gcn_layer_noweight_kernel(%arg0: i32, %arg1: i32, %arg2: memref<128x512xbf16, #tpu.memory_space<vmem>>, %arg3: memref<512x128xbf16, #tpu.memory_space<vmem>>, %arg4: memref<1x128xf32, #tpu.memory_space<vmem>>, %arg5: memref<128x128xbf16, #tpu.memory_space<vmem>>, %arg6: memref<128x128xf32, #tpu.memory_space<vmem>>) attributes {dimension_semantics = [#tpu.dimension_semantics<parallel>, #tpu.dimension_semantics<arbitrary>], iteration_bounds = array<i64: 4, 1>, scalar_prefetch = 0 : i64, scratch_operands = 1 : i64, tpu.core_type = #tpu.core_type<tc>, window_params = [{transform_indices = @transform_0, window_bounds = array<i64: 128, 512>}, {transform_indices = @transform_1, window_bounds = array<i64: 512, 128>}, {pipeline_mode = #tpu.pipeline_mode<synchronous>, transform_indices = @transform_2, window_bounds = array<i64: 1, 128>}, {transform_indices = @transform_3, window_bounds = array<i64: 128, 128>}]} {
    %c0_i32 = arith.constant 0 : i32
    %0 = arith.cmpi eq, %arg1, %c0_i32 : i32
    %1 = arith.extui %0 : i1 to i32
    %c0_i32_0 = arith.constant 0 : i32
    %2 = arith.cmpi ne, %1, %c0_i32_0 : i32
    scf.if %2 {
      %cst_10 = arith.constant 0.000000e+00 : f32
      %12 = vector.broadcast %cst_10 : f32 to vector<128x128xf32>
      %c0_11 = arith.constant 0 : index
      %c0_12 = arith.constant 0 : index
      %13 = vector.load %arg6[%c0_11, %c0_12] : memref<128x128xf32, #tpu.memory_space<vmem>>, vector<128x128xf32>
      tpu.vector_store %arg6[%c0_11, %c0_12], %12 {strides = array<i32>} : memref<128x128xf32, #tpu.memory_space<vmem>>, vector<128x128xf32>,
    } else {
    }
    %c0 = arith.constant 0 : index
    %c0_1 = arith.constant 0 : index
    %3 = vector.load %arg6[%c0, %c0_1] : memref<128x128xf32, #tpu.memory_space<vmem>>, vector<128x128xf32>
    %c0_2 = arith.constant 0 : index
    %c0_3 = arith.constant 0 : index
    %4 = vector.load %arg2[%c0_2, %c0_3] : memref<128x512xbf16, #tpu.memory_space<vmem>>, vector<128x512xbf16>
    %c0_4 = arith.constant 0 : index
    %c0_5 = arith.constant 0 : index
    %5 = vector.load %arg3[%c0_4, %c0_5] : memref<512x128xbf16, #tpu.memory_space<vmem>>, vector<512x128xbf16>
    %cst = arith.constant dense<0.000000e+00> : vector<128x128xf32>
    %6 = tpu.matmul %4, %5, %cst {dimension_numbers = #tpu.dot_dimension_numbers<[1], [0], [0], [1], [0, 0, 1, 1], [], []>} : vector<128x512xbf16>, vector<512x128xbf16>, vector<128x128xf32> -> vector<128x128xf32>
    %7 = arith.addf %3, %6 : vector<128x128xf32>
    %c0_6 = arith.constant 0 : index
    %c0_7 = arith.constant 0 : index
    %8 = vector.load %arg6[%c0_6, %c0_7] : memref<128x128xf32, #tpu.memory_space<vmem>>, vector<128x128xf32>
    tpu.vector_store %arg6[%c0_6, %c0_7], %7 {strides = array<i32>} : memref<128x128xf32, #tpu.memory_space<vmem>>, vector<128x128xf32>,
    %c0_i32_8 = arith.constant 0 : i32
    %9 = arith.cmpi eq, %arg1, %c0_i32_8 : i32
    %10 = arith.extui %9 : i1 to i32
    %c0_i32_9 = arith.constant 0 : i32
    %11 = arith.cmpi ne, %10, %c0_i32_9 : i32
    scf.if %11 {
      %c0_10 = arith.constant 0 : index
      %c0_11 = arith.constant 0 : index
      %12 = vector.load %arg6[%c0_10, %c0_11] : memref<128x128xf32, #tpu.memory_space<vmem>>, vector<128x128xf32>
      %c0_12 = arith.constant 0 : index
      %c0_13 = arith.constant 0 : index
      %13 = vector.load %arg4[%c0_12, %c0_13] : memref<1x128xf32, #tpu.memory_space<vmem>>, vector<1x128xf32>
      %14 = vector.broadcast %13 : vector<1x128xf32> to vector<128x128xf32>
      %15 = arith.addf %12, %14 : vector<128x128xf32>
      %cst_14 = arith.constant 0.000000e+00 : f32
      %16 = vector.broadcast %cst_14 : f32 to vector<128x128xf32>
      %17 = arith.maximumf %15, %16 : vector<128x128xf32>
      %18 = arith.truncf %17 : vector<128x128xf32> to vector<128x128xbf16>
      %c0_15 = arith.constant 0 : index
      %c0_16 = arith.constant 0 : index
      %19 = vector.load %arg5[%c0_15, %c0_16] : memref<128x128xbf16, #tpu.memory_space<vmem>>, vector<128x128xbf16>
      tpu.vector_store %arg5[%c0_15, %c0_16], %18 {strides = array<i32>} : memref<128x128xbf16, #tpu.memory_space<vmem>>, vector<128x128xbf16>,
    } else {
    }
    return
  }
  func.func @transform_0(%arg0: i32, %arg1: i32) -> (i32, i32) {
    %c0_i32 = arith.constant 0 : i32
    return %arg0, %arg1 : i32, i32
  }
  func.func @transform_1(%arg0: i32, %arg1: i32) -> (i32, i32) {
    %c0_i32 = arith.constant 0 : i32
    %c0_i32_0 = arith.constant 0 : i32
    return %arg1, %c0_i32 : i32, i32
  }
  func.func @transform_2(%arg0: i32, %arg1: i32) -> (i32, i32) {
    %c0_i32 = arith.constant 0 : i32
    %c0_i32_0 = arith.constant 0 : i32
    %c0_i32_1 = arith.constant 0 : i32
    return %c0_i32, %c0_i32_0 : i32, i32
  }
  func.func @transform_3(%arg0: i32, %arg1: i32) -> (i32, i32) {
    %c0_i32 = arith.constant 0 : i32
    %c0_i32_0 = arith.constant 0 : i32
    return %arg0, %c0_i32 : i32, i32
  }
}

module attributes {stable_mosaic.version = 11 : i64} {
  func.func @_grouped_linear_kernel(%arg0: i32, %arg1: memref<4xi32, #tpu.memory_space<smem>>, %arg2: memref<128x128xf32, #tpu.memory_space<vmem>>, %arg3: memref<1x128x128xf32, #tpu.memory_space<vmem>>, %arg4: memref<1x1x128xf32, #tpu.memory_space<vmem>>, %arg5: memref<128x128xbf16, #tpu.memory_space<vmem>>) attributes {dimension_semantics = [#tpu.dimension_semantics<parallel>], iteration_bounds = array<i64: 4>, scalar_prefetch = 1 : i64, scratch_operands = 0 : i64, tpu.core_type = #tpu.core_type<tc>, window_params = [{transform_indices = @transform_0, window_bounds = array<i64: 128, 128>}, {transform_indices = @transform_1, window_bounds = array<i64: 1, 128, 128>}, {transform_indices = @transform_2, window_bounds = array<i64: 1, 1, 128>}, {transform_indices = @transform_3, window_bounds = array<i64: 128, 128>}]} {
    %c0 = arith.constant 0 : index
    %c0_0 = arith.constant 0 : index
    %0 = vector.load %arg2[%c0, %c0_0] : memref<128x128xf32, #tpu.memory_space<vmem>>, vector<128x128xf32>
    %c0_1 = arith.constant 0 : index
    %c0_2 = arith.constant 0 : index
    %c0_3 = arith.constant 0 : index
    %1 = vector.load %arg3[%c0_1, %c0_2, %c0_3] : memref<1x128x128xf32, #tpu.memory_space<vmem>>, vector<1x128x128xf32>
    %2 = vector.shape_cast %1 : vector<1x128x128xf32> to vector<128x128xf32>
    %cst = arith.constant dense<0.000000e+00> : vector<128x128xf32>
    %3 = tpu.matmul %0, %2, %cst {dimension_numbers = #tpu.dot_dimension_numbers<[1], [0], [0], [1], [0, 0, 1, 1], [], []>} : vector<128x128xf32>, vector<128x128xf32>, vector<128x128xf32> -> vector<128x128xf32>
    %c0_4 = arith.constant 0 : index
    %c0_5 = arith.constant 0 : index
    %c0_6 = arith.constant 0 : index
    %4 = vector.load %arg4[%c0_4, %c0_5, %c0_6] : memref<1x1x128xf32, #tpu.memory_space<vmem>>, vector<1x1x128xf32>
    %5 = vector.shape_cast %4 : vector<1x1x128xf32> to vector<1x128xf32>
    %6 = vector.broadcast %5 : vector<1x128xf32> to vector<128x128xf32>
    %7 = arith.addf %3, %6 : vector<128x128xf32>
    %8 = arith.truncf %7 : vector<128x128xf32> to vector<128x128xbf16>
    %c0_7 = arith.constant 0 : index
    %c0_8 = arith.constant 0 : index
    %9 = vector.load %arg5[%c0_7, %c0_8] : memref<128x128xbf16, #tpu.memory_space<vmem>>, vector<128x128xbf16>
    tpu.vector_store %arg5[%c0_7, %c0_8], %8 {strides = array<i32>} : memref<128x128xbf16, #tpu.memory_space<vmem>>, vector<128x128xbf16>,
    return
  }
  func.func @transform_0(%arg0: i32, %arg1: memref<4xi32, #tpu.memory_space<smem>>) -> (i32, i32) {
    %c0_i32 = arith.constant 0 : i32
    %c0_i32_0 = arith.constant 0 : i32
    return %arg0, %c0_i32 : i32, i32
  }
  func.func @transform_1(%arg0: i32, %arg1: memref<4xi32, #tpu.memory_space<smem>>) -> (i32, i32, i32) {
    %0 = arith.index_cast %arg0 : i32 to index
    %1 = memref.load %arg1[%0] : memref<4xi32, #tpu.memory_space<smem>>
    %c0_i32 = arith.constant 0 : i32
    %c0_i32_0 = arith.constant 0 : i32
    %c0_i32_1 = arith.constant 0 : i32
    return %1, %c0_i32, %c0_i32_0 : i32, i32, i32
  }
  func.func @transform_2(%arg0: i32, %arg1: memref<4xi32, #tpu.memory_space<smem>>) -> (i32, i32, i32) {
    %0 = arith.index_cast %arg0 : i32 to index
    %1 = memref.load %arg1[%0] : memref<4xi32, #tpu.memory_space<smem>>
    %c0_i32 = arith.constant 0 : i32
    %c0_i32_0 = arith.constant 0 : i32
    %c0_i32_1 = arith.constant 0 : i32
    return %1, %c0_i32, %c0_i32_0 : i32, i32, i32
  }
  func.func @transform_3(%arg0: i32, %arg1: memref<4xi32, #tpu.memory_space<smem>>) -> (i32, i32) {
    %c0_i32 = arith.constant 0 : i32
    %c0_i32_0 = arith.constant 0 : i32
    return %arg0, %c0_i32 : i32, i32
  }
}

module attributes {stable_mosaic.version = 11 : i64} {
  func.func @_gcn_layer_weighted_kernel(%arg0: i32, %arg1: i32, %arg2: memref<128x512xbf16, #tpu.memory_space<vmem>>, %arg3: memref<512x128xbf16, #tpu.memory_space<vmem>>, %arg4: memref<128x128xbf16, #tpu.memory_space<vmem>>, %arg5: memref<1x128xf32, #tpu.memory_space<vmem>>, %arg6: memref<128x128xbf16, #tpu.memory_space<vmem>>, %arg7: memref<128x128xf32, #tpu.memory_space<vmem>>) attributes {dimension_semantics = [#tpu.dimension_semantics<parallel>, #tpu.dimension_semantics<arbitrary>], iteration_bounds = array<i64: 4, 1>, scalar_prefetch = 0 : i64, scratch_operands = 1 : i64, tpu.core_type = #tpu.core_type<tc>, window_params = [{transform_indices = @transform_0, window_bounds = array<i64: 128, 512>}, {transform_indices = @transform_1, window_bounds = array<i64: 512, 128>}, {pipeline_mode = #tpu.pipeline_mode<synchronous>, transform_indices = @transform_2, window_bounds = array<i64: 128, 128>}, {pipeline_mode = #tpu.pipeline_mode<synchronous>, transform_indices = @transform_3, window_bounds = array<i64: 1, 128>}, {transform_indices = @transform_4, window_bounds = array<i64: 128, 128>}]} {
    %c0_i32 = arith.constant 0 : i32
    %0 = arith.cmpi eq, %arg1, %c0_i32 : i32
    %1 = arith.extui %0 : i1 to i32
    %c0_i32_0 = arith.constant 0 : i32
    %2 = arith.cmpi ne, %1, %c0_i32_0 : i32
    scf.if %2 {
      %cst_10 = arith.constant 0.000000e+00 : f32
      %12 = vector.broadcast %cst_10 : f32 to vector<128x128xf32>
      %c0_11 = arith.constant 0 : index
      %c0_12 = arith.constant 0 : index
      %13 = vector.load %arg7[%c0_11, %c0_12] : memref<128x128xf32, #tpu.memory_space<vmem>>, vector<128x128xf32>
      tpu.vector_store %arg7[%c0_11, %c0_12], %12 {strides = array<i32>} : memref<128x128xf32, #tpu.memory_space<vmem>>, vector<128x128xf32>,
    } else {
    }
    %c0 = arith.constant 0 : index
    %c0_1 = arith.constant 0 : index
    %3 = vector.load %arg7[%c0, %c0_1] : memref<128x128xf32, #tpu.memory_space<vmem>>, vector<128x128xf32>
    %c0_2 = arith.constant 0 : index
    %c0_3 = arith.constant 0 : index
    %4 = vector.load %arg2[%c0_2, %c0_3] : memref<128x512xbf16, #tpu.memory_space<vmem>>, vector<128x512xbf16>
    %c0_4 = arith.constant 0 : index
    %c0_5 = arith.constant 0 : index
    %5 = vector.load %arg3[%c0_4, %c0_5] : memref<512x128xbf16, #tpu.memory_space<vmem>>, vector<512x128xbf16>
    %cst = arith.constant dense<0.000000e+00> : vector<128x128xf32>
    %6 = tpu.matmul %4, %5, %cst {dimension_numbers = #tpu.dot_dimension_numbers<[1], [0], [0], [1], [0, 0, 1, 1], [], []>} : vector<128x512xbf16>, vector<512x128xbf16>, vector<128x128xf32> -> vector<128x128xf32>
    %7 = arith.addf %3, %6 : vector<128x128xf32>
    %c0_6 = arith.constant 0 : index
    %c0_7 = arith.constant 0 : index
    %8 = vector.load %arg7[%c0_6, %c0_7] : memref<128x128xf32, #tpu.memory_space<vmem>>, vector<128x128xf32>
    tpu.vector_store %arg7[%c0_6, %c0_7], %7 {strides = array<i32>} : memref<128x128xf32, #tpu.memory_space<vmem>>, vector<128x128xf32>,
    %c0_i32_8 = arith.constant 0 : i32
    %9 = arith.cmpi eq, %arg1, %c0_i32_8 : i32
    %10 = arith.extui %9 : i1 to i32
    %c0_i32_9 = arith.constant 0 : i32
    %11 = arith.cmpi ne, %10, %c0_i32_9 : i32
    scf.if %11 {
      %c0_10 = arith.constant 0 : index
      %c0_11 = arith.constant 0 : index
      %12 = vector.load %arg7[%c0_10, %c0_11] : memref<128x128xf32, #tpu.memory_space<vmem>>, vector<128x128xf32>
      %13 = arith.truncf %12 : vector<128x128xf32> to vector<128x128xbf16>
      %c0_12 = arith.constant 0 : index
      %c0_13 = arith.constant 0 : index
      %14 = vector.load %arg4[%c0_12, %c0_13] : memref<128x128xbf16, #tpu.memory_space<vmem>>, vector<128x128xbf16>
      %cst_14 = arith.constant dense<0.000000e+00> : vector<128x128xf32>
      %15 = tpu.matmul %13, %14, %cst_14 {dimension_numbers = #tpu.dot_dimension_numbers<[1], [0], [0], [1], [0, 0, 1, 1], [], []>} : vector<128x128xbf16>, vector<128x128xbf16>, vector<128x128xf32> -> vector<128x128xf32>
      %c0_15 = arith.constant 0 : index
      %c0_16 = arith.constant 0 : index
      %16 = vector.load %arg5[%c0_15, %c0_16] : memref<1x128xf32, #tpu.memory_space<vmem>>, vector<1x128xf32>
      %17 = vector.broadcast %16 : vector<1x128xf32> to vector<128x128xf32>
      %18 = arith.addf %15, %17 : vector<128x128xf32>
      %cst_17 = arith.constant 0.000000e+00 : f32
      %19 = vector.broadcast %cst_17 : f32 to vector<128x128xf32>
      %20 = arith.maximumf %18, %19 : vector<128x128xf32>
      %21 = arith.truncf %20 : vector<128x128xf32> to vector<128x128xbf16>
      %c0_18 = arith.constant 0 : index
      %c0_19 = arith.constant 0 : index
      %22 = vector.load %arg6[%c0_18, %c0_19] : memref<128x128xbf16, #tpu.memory_space<vmem>>, vector<128x128xbf16>
      tpu.vector_store %arg6[%c0_18, %c0_19], %21 {strides = array<i32>} : memref<128x128xbf16, #tpu.memory_space<vmem>>, vector<128x128xbf16>,
    } else {
    }
    return
  }
  func.func @transform_0(%arg0: i32, %arg1: i32) -> (i32, i32) {
    %c0_i32 = arith.constant 0 : i32
    return %arg0, %arg1 : i32, i32
  }
  func.func @transform_1(%arg0: i32, %arg1: i32) -> (i32, i32) {
    %c0_i32 = arith.constant 0 : i32
    %c0_i32_0 = arith.constant 0 : i32
    return %arg1, %c0_i32 : i32, i32
  }
  func.func @transform_2(%arg0: i32, %arg1: i32) -> (i32, i32) {
    %c0_i32 = arith.constant 0 : i32
    %c0_i32_0 = arith.constant 0 : i32
    %c0_i32_1 = arith.constant 0 : i32
    return %c0_i32, %c0_i32_0 : i32, i32
  }
  func.func @transform_3(%arg0: i32, %arg1: i32) -> (i32, i32) {
    %c0_i32 = arith.constant 0 : i32
    %c0_i32_0 = arith.constant 0 : i32
    %c0_i32_1 = arith.constant 0 : i32
    return %c0_i32, %c0_i32_0 : i32, i32
  }
  func.func @transform_4(%arg0: i32, %arg1: i32) -> (i32, i32) {
    %c0_i32 = arith.constant 0 : i32
    %c0_i32_0 = arith.constant 0 : i32
    return %arg0, %c0_i32 : i32, i32
  }
}

module attributes {stable_mosaic.version = 11 : i64} {
  func.func @_linear_kernel(%arg0: i32, %arg1: memref<128x128xbf16, #tpu.memory_space<vmem>>, %arg2: memref<128x128xbf16, #tpu.memory_space<vmem>>, %arg3: memref<1x128xf32, #tpu.memory_space<vmem>>, %arg4: memref<128x128xf32, #tpu.memory_space<vmem>>) attributes {dimension_semantics = [#tpu.dimension_semantics<parallel>], iteration_bounds = array<i64: 4>, scalar_prefetch = 0 : i64, scratch_operands = 0 : i64, tpu.core_type = #tpu.core_type<tc>, window_params = [{transform_indices = @transform_0, window_bounds = array<i64: 128, 128>}, {pipeline_mode = #tpu.pipeline_mode<synchronous>, transform_indices = @transform_1, window_bounds = array<i64: 128, 128>}, {pipeline_mode = #tpu.pipeline_mode<synchronous>, transform_indices = @transform_2, window_bounds = array<i64: 1, 128>}, {transform_indices = @transform_3, window_bounds = array<i64: 128, 128>}]} {
    %c0 = arith.constant 0 : index
    %c0_0 = arith.constant 0 : index
    %0 = vector.load %arg1[%c0, %c0_0] : memref<128x128xbf16, #tpu.memory_space<vmem>>, vector<128x128xbf16>
    %c0_1 = arith.constant 0 : index
    %c0_2 = arith.constant 0 : index
    %1 = vector.load %arg2[%c0_1, %c0_2] : memref<128x128xbf16, #tpu.memory_space<vmem>>, vector<128x128xbf16>
    %cst = arith.constant dense<0.000000e+00> : vector<128x128xf32>
    %2 = tpu.matmul %0, %1, %cst {dimension_numbers = #tpu.dot_dimension_numbers<[1], [0], [0], [1], [0, 0, 1, 1], [], []>} : vector<128x128xbf16>, vector<128x128xbf16>, vector<128x128xf32> -> vector<128x128xf32>
    %c0_3 = arith.constant 0 : index
    %c0_4 = arith.constant 0 : index
    %3 = vector.load %arg3[%c0_3, %c0_4] : memref<1x128xf32, #tpu.memory_space<vmem>>, vector<1x128xf32>
    %4 = vector.broadcast %3 : vector<1x128xf32> to vector<128x128xf32>
    %5 = arith.addf %2, %4 : vector<128x128xf32>
    %c0_5 = arith.constant 0 : index
    %c0_6 = arith.constant 0 : index
    %6 = vector.load %arg4[%c0_5, %c0_6] : memref<128x128xf32, #tpu.memory_space<vmem>>, vector<128x128xf32>
    tpu.vector_store %arg4[%c0_5, %c0_6], %5 {strides = array<i32>} : memref<128x128xf32, #tpu.memory_space<vmem>>, vector<128x128xf32>,
    return
  }
  func.func @transform_0(%arg0: i32) -> (i32, i32) {
    %c0_i32 = arith.constant 0 : i32
    %c0_i32_0 = arith.constant 0 : i32
    return %arg0, %c0_i32 : i32, i32
  }
  func.func @transform_1(%arg0: i32) -> (i32, i32) {
    %c0_i32 = arith.constant 0 : i32
    %c0_i32_0 = arith.constant 0 : i32
    %c0_i32_1 = arith.constant 0 : i32
    return %c0_i32, %c0_i32_0 : i32, i32
  }
  func.func @transform_2(%arg0: i32) -> (i32, i32) {
    %c0_i32 = arith.constant 0 : i32
    %c0_i32_0 = arith.constant 0 : i32
    %c0_i32_1 = arith.constant 0 : i32
    return %c0_i32, %c0_i32_0 : i32, i32
  }
  func.func @transform_3(%arg0: i32) -> (i32, i32) {
    %c0_i32 = arith.constant 0 : i32
    %c0_i32_0 = arith.constant 0 : i32
    return %arg0, %c0_i32 : i32, i32
  }
}

</mosaic_0001>

<bundles_post_ra>
// kernel: _forward_padded.4
= control target key start
LH: loop header
LB: loop body
LE: loop exit
PB: predicated region body
PF: predicated region fallthrough
CT: control target
= control target key end

     0   :  { %s1050_s15 = smov [#allocation3]   ;;  %s1339_s0 = inlined_call_operand.hbm [shape: s32[4], index: 0, kind: input, shape index: {}]   ;;  %s1340_s1 = inlined_call_operand.hbm [shape: f32[512,128], index: 1, kind: input, shape index: {}]   ;;  %s1341_s2 = inlined_call_operand.hbm [shape: f32[2,128,128], index: 2, kind: input, shape index: {}]   ;;  %s1342_s3 = inlined_call_operand.vmem [shape: f32[2,1,128], index: 3, kind: input, shape index: {}]   ;;  %s1343_s4 = inlined_call_operand.vmem [shape: bf16[512,128], index: 4, kind: output, shape index: {}]  }
   0x1   :  { %10 = dma.hbm_to_smem %s1339_s0, 16, %s1050_s15, [#allocation2] }
   0x2   :  { %1012 = dma.done.wait [#allocation2], 16 }
   0x3   :  { %1013 = vsyncadd [#allocation2], 4294967280 }
   0x4   :  { %12 = sfence }
   0x5   :  { %13 = vsyncpa [#allocation5], 0 }
   0x6   :  { %15 = vsyncpa [#allocation5 + $0x1], 0 }
   0x7   :  { %16 = vsyncpa [#allocation7], 0 }
   0x8   :  { %18 = vsyncpa [#allocation7 + $0x1], 0  ;;  %s1083_s18 = smov 0   ;;  %s1085_s19 = smov 0  }
   0x9   :  { %s1087_s20 = smov 0   ;;  %s1089_s21 = smov 0  }
   0xa   :  { %s1091_s22 = smov 0   ;;  %s1093_s23 = smov 0  }
   0xb   :  { %s1095_s0 = smov 0  }
   0xc LB: > { %s1117_s24 = sadd.s32 4294967295, %s1048_s0   ;;  %s1120_s25 = sadd.s32 1, %s1048_s0   ;;  %s1048_s0 = sphi %s1095_s0, %s1371_s0   ;;  %s1044_s23 = sphi %s1093_s23, %s1370_s23   ;;  %s1040_s22 = sphi %s1091_s22, %s1369_s22   ;;  %s1036_s21 = sphi %s1089_s21, %s1368_s21   ;;  %s1032_s20 = sphi %s1087_s20, %s1367_s20   ;;  %s1028_s19 = sphi %s1085_s19, %s1366_s19   ;;  %s1024_s18 = sphi %s1083_s18, %s1365_s18  }
   0xd   : > { %s28_s26 = ssub.s32 %s1048_s0, %s1120_s25  ;;  %s31_s27 = sadd.s32 1, %s1044_s23 }
   0xe   : > { %p29_p0 = scmp.eq.s32.totalorder %s28_s26, 0  ;;  %p38_p1 = scmp.ne.s32.totalorder %s1044_s23, %s1040_s22 }
   0xf   : > { %p1346_p2 = scmp.eq.s32.totalorder %s1048_s0, 0  ;;  %p44_p3 = scmp.ne.s32.totalorder %s1040_s22, %s1036_s21 }
  0x10   : > { %s1130_s28 = scalar_select %p29_p0, %s1044_s23, %s31_s27  }
  0x11   : > { %p40_p4 = por %p1346_p2, %p38_p1  ;;  %p1345_p5 = scmp.eq.s32.totalorder %s1117_s24, 0 }
  0x12   : > { %s1136_s29 = sld [smem:[#allocation3 + %s1120_s25]]  ;;  %p1344_p7 = scmp.lt.s32.totalorder %s1048_s0, 4 }
  0x13   : > { %p1140_p6 = por %p1345_p5, %p44_p3  ;;  %s150_s5 = sand.u32 1, %s1044_s23  }
  0x14   : > { %s660_s6 = sshll.u32 %s1048_s0, 11  ;;  %s630_s7 = sshll.u32 %s150_s5, 7 }
  0x15   : > { %s1350_s30 = scalar_select %p1140_p6, 1, 0 }
  0x16   : > { %s1150_s10 = scalar_lea.hbm %s1340_s1, %s660_s6  ;;  %s154_s11 = scalar_lea.vmem [#allocation4], %s630_s7 }
  0x17   : > { %s161_s12 = sshll.u32 %s154_s11, 4  ;;  %p1154_p8 = pnand %p1344_p7, %p40_p4  ;;  %s1158_s12 = int_to_ptr.vmem [resolvable:$true] %s161_s12 }
  0x18   : > { %s1160_s14 = scalar_lea.sflag [#allocation5], %s150_s5  ;;  %s928_s15 = scalar_lea.hbm %s1150_s10, 2048 }
  0x19   : > { %p929_p9 = scmp.ne.s32.totalorder %s1150_s10, %s928_s15  ;;  %p930_p10 = pneg %p1154_p8 }
  0x1a   : > { %s933_s21 = scalar_lea.hbm %s1340_s1, 8192  ;;  %p934_p13 = scmp.lt.s32.totalorder %s1150_s10, %s1340_s1 }
  0x1b   : > { %p931_p11 = pnand %p930_p10, %p929_p9  ;;  %p935_p0 = scmp.lt.s32.totalorder %s933_s21, %s928_s15 }
  0x1d   : > { %p932_p12 = pneg %p931_p11  ;;  %p936_p1 = por %p935_p0, %p934_p13 }
  0x1f   : > { %p937_p3 = pnand %p936_p1, %p932_p12 }
  0x21   : > { %940 = shalt.err (!%p937_p3)
}
  0x22   : > { %s941_s5 = scalar_lea.vmem %s1158_s12, 2048  ;;  %s1051_s6 = smov [#allocation4]  }
  0x23   : > { %p942_p4 = scmp.ne.s32.totalorder %s1158_s12, %s941_s5  ;;  %s946_s7 = sshll.u32 %s1051_s6, 4  ;;  %s947_s7 = int_to_ptr.vmem [resolvable:$false] %s946_s7 }
  0x24   : > { %s948_s8 = scalar_lea.vmem %s947_s7, 4096  ;;  %p949_p11 = scmp.lt.s32.totalorder %s1158_s12, %s947_s7 }
  0x25   : > { %p944_p7 = pnand %p942_p4, %p930_p10  ;;  %p950_p5 = scmp.lt.s32.totalorder %s948_s8, %s941_s5 }
  0x27   : > { %p945_p9 = pneg %p944_p7  ;;  %p951_p2 = por %p950_p5, %p949_p11 }
  0x29   : > { %p952_p6 = pnand %p951_p2, %p945_p9 }
  0x2b   : > { %955 = shalt.err (!%p952_p6)
}
  0x2c   : > { %s1348_s9 = smov 128   ;;  %s1053_s11 = smov 8  }
  0x2d   : > { %854 = dma.hbm_to_vmem [thread:$0]  (!%p1154_p8), %s1150_s10, 2048, %s1158_s12, %s1160_s14, %s1348_s9, %s1348_s9, %s1053_s11  }
  0x2e   : > { %p636_p2 = scmp.ge.s32.totalorder %s1048_s0, 1  ;;  %p199_p5 = scmp.lt.s32.totalorder %s1048_s0, 5 }
  0x2f   : > { %s54_s16 = sld [smem:[#allocation3 + %s1048_s0]]  ;;  %p66_p7 = scmp.ne.s32.totalorder %s1032_s20, %s1028_s19 }
  0x30   : > { %p1186_p6 = pnand %p636_p2, %p199_p5  ;;  %p72_p10 = scmp.ne.s32.totalorder %s1028_s19, %s1024_s18 }
  0x31   : > { %s171_s17 = sand.u32 1, %s1032_s20   ;;  %p1353_p12 = scmp.eq.s32.totalorder %s1048_s0, 0 }
  0x32   : > { %s1352_s15 = scalar_select %p1186_p6, 1, 0 }
  0x33   : > { %p68_p13 = por %p66_p7, %p1353_p12  ;;  %p1354_p0 = scmp.eq.s32.totalorder %s1117_s24, 0 }
  0x34   : > { %s59_s10 = sadd.s32 1, %s1032_s20  ;;  %s633_s14 = sshll.u32 %s171_s17, 7 }
  0x35   : > { %p1200_p1 = por %p72_p10, %p1354_p0  ;;  %s56_s12 = ssub.s32 %s54_s16, %s1136_s29 }
  0x36   : > { %p57_p8 = scmp.eq.s32.totalorder %s56_s12, 0  ;;  %p1356_p3 = scmp.lt.s32.totalorder %s1048_s0, 4 }
  0x37   : > { %s1355_s13 = scalar_select %p1200_p1, 1, 0 }
  0x38   : > { %p1208_p4 = pnand %p1356_p3, %p68_p13  ;;  %p1358_p9 = pmov %p1356_p3 }
  0x39   : > { %s846_s26 = scalar_select %p68_p13, [#allocation3], [#allocation8] }
  0x3a   : > { %s1213_s18 = scalar_select %p57_p8, %s1032_s20, %s59_s10  }
  0x3b   : > { %s847_s27 = scalar_select %p68_p13, %s1048_s0, 0 }
  0x3c   : > { %s1373_s26 = smov (!%p1358_p9, %s846_s26), [#allocation9]  ;;  %p1359_p11 = pmov %p1356_p3 }
  0x3d   : > { %s175_s6 = scalar_lea.vmem [#allocation6], %s633_s14  ;;  %s1227_s10 = scalar_lea.sflag [#allocation7], %s171_s17 }
  0x3e   : > { %s1375_s27 = smov (!%p1359_p11, %s847_s27), 0  ;;  %s183_s7 = sshll.u32 %s175_s6, 4  ;;  %s1220_s7 = int_to_ptr.vmem [resolvable:$true] %s183_s7 }
  0x3f   : > { %s176_s5 = sld [smem:[%s1373_s26 + %s1375_s27]]  ;;  %p958_p5 = pneg %p1208_p4 }
  0x40   : > { %s961_s26 = scalar_lea.hbm %s1341_s2, 4096 }
  0x45   : > { %s661_s29 = sshll.u32 %s176_s5, 11 }
  0x46   : > { %s1225_s12 = scalar_lea.hbm %s1341_s2, %s661_s29 }
  0x47   : > { %s956_s9 = scalar_lea.hbm %s1225_s12, 2048  ;;  %p962_p12 = scmp.lt.s32.totalorder %s1225_s12, %s1341_s2 }
  0x48   : > { %p957_p2 = scmp.ne.s32.totalorder %s1225_s12, %s956_s9  ;;  %p963_p13 = scmp.lt.s32.totalorder %s961_s26, %s956_s9 }
  0x4a   : > { %p959_p7 = pnand %p958_p5, %p957_p2  ;;  %p964_p0 = por %p963_p13, %p962_p12 }
  0x4c   : > { %p960_p10 = pneg %p959_p7 }
  0x4e   : > { %p965_p8 = pnand %p964_p0, %p960_p10 }
  0x50   : > { %968 = shalt.err (!%p965_p8)
}
  0x51   : > { %s969_s17 = scalar_lea.vmem %s1220_s7, 2048  ;;  %s1054_s6 = smov [#allocation6]  }
  0x52   : > { %p970_p3 = scmp.ne.s32.totalorder %s1220_s7, %s969_s17  ;;  %s974_s29 = sshll.u32 %s1054_s6, 4  ;;  %s975_s29 = int_to_ptr.vmem [resolvable:$false] %s974_s29 }
  0x53   : > { %s976_s8 = scalar_lea.vmem %s975_s29, 4096  ;;  %p977_p2 = scmp.lt.s32.totalorder %s1220_s7, %s975_s29 }
  0x54   : > { %p972_p9 = pnand %p970_p3, %p958_p5  ;;  %p978_p7 = scmp.lt.s32.totalorder %s976_s8, %s969_s17 }
  0x56   : > { %p973_p11 = pneg %p972_p9  ;;  %p979_p1 = por %p978_p7, %p977_p2 }
  0x58   : > { %p980_p6 = pnand %p979_p1, %p973_p11 }
  0x5a   : > { %983 = shalt.err (!%p980_p6)
}
  0x5b   : > { %s1360_s9 = smov 128   ;;  %p1361_p5 = scmp.ne.s32.totalorder %s1352_s15, 0 }
  0x5c   : > { %859 = dma.hbm_to_vmem [thread:$0]  (!%p1208_p4), %s1225_s12, 2048, %s1220_s7, %s1227_s10, %s1360_s9, %s1360_s9, %s1053_s11  }
  0x5d   : > { %203 = sbr.rel (%p1361_p5) target bundleno = 349 (0x15d), region = 32  ;;  %s205_s16 = sand.u32 (!%p1361_p5), 1, %s1040_s22  }
  0x5e   : > { %s637_s0 = sshll.u32 (!%p1361_p5), %s205_s16, 7  ;;  %s206_s14 = scalar_lea.sflag (!%p1361_p5), [#allocation5], %s205_s16 }
  0x5f   : > { %s1254_s26 = scalar_lea.vmem (!%p1361_p5), [#allocation4], %s637_s0  ;;  %p1362_p6 = scmp.ne.s32.totalorder (!%p1361_p5), %s1350_s30, 0 }
  0x62   : > { %1015 = dma.done.wait (%p1362_p6), %s206_s14, 2048  }
  0x63   : > { %1017 = vsyncadd (%p1362_p6), %s206_s14, 4294965248  ;;  %s214_s21 = sand.u32 1, %s1028_s19   ;;  %p1363_p1 = scmp.ne.s32.totalorder %s1355_s13, 0 }
  0x64   : > { %s638_s27 = sshll.u32 %s214_s21, 7  ;;  %s215_s11 = scalar_lea.sflag [#allocation7], %s214_s21 }
  0x65   : > { %s1261_s7 = scalar_lea.vmem [#allocation6], %s638_s27 }
  0x66   : > { %1019 = dma.done.wait (%p1363_p1), %s215_s11, 2048  }
  0x67   : > { %1021 = vsyncadd (%p1363_p1), %s215_s11, 4294965248  ;;  %v294_v0 = vld [vmem:[%s1261_s7 + $0x78] sm:$0xff]  ;;  %v293_v1 = vld [vmem:[%s1261_s7 + $0x70] sm:$0xff]  ;;  %s252_s30 = sld [smem:[#allocation3 + %s1117_s24]]  ;;  %s639_s15 = sshll.u32 %s1117_s24, 4 }
  0x68   : > { %757 = vmatprep.subr.mxu0 %v294_v0  ;;  %813 = vmatprep.subr.mxu1 %v294_v0  ;;  %v292_v2 = vld [vmem:[%s1261_s7 + $0x68] sm:$0xff]  ;;  %v291_v3 = vld [vmem:[%s1261_s7 + $0x60] sm:$0xff]  ;;  %v290_v4 = vld [vmem:[%s1261_s7 + $0x58] sm:$0xff]  ;;  %p258_p10 = scmp.lt.s32.totalorder %s639_s15, 63 }
  0x69   : > { %758 = vmatpush3.msra.mxu0 %v294_v0  ;;  %829 = vmatpush3.msra.mxu1 %v294_v0  ;;  %v289_v5 = vld [vmem:[%s1261_s7 + $0x50] sm:$0xff]  ;;  %v288_v6 = vld [vmem:[%s1261_s7 + $0x48] sm:$0xff]  ;;  %v287_v7 = vld [vmem:[%s1261_s7 + $0x40] sm:$0xff] }
  0x6a   : > { %759 = vmatprep.subr.mxu0 %v293_v1  ;;  %814 = vmatprep.subr.mxu1 %v293_v1  ;;  %v286_v8 = vld [vmem:[%s1261_s7 + $0x38] sm:$0xff]  ;;  %v285_v9 = vld [vmem:[%s1261_s7 + $0x30] sm:$0xff]  ;;  %v284_v10 = vld [vmem:[%s1261_s7 + $0x28] sm:$0xff]  ;;  %s1379_s15 = smov (!%p258_p10, %s639_s15), 63 }
  0x6b   : > { %760 = vmatpush3.msra.mxu0 %v293_v1  ;;  %830 = vmatpush3.msra.mxu1 %v293_v1  ;;  %v283_v11 = vld [vmem:[%s1261_s7 + $0x20] sm:$0xff]  ;;  %v282_v12 = vld [vmem:[%s1261_s7 + $0x18] sm:$0xff]  ;;  %v281_v13 = vld [vmem:[%s1261_s7 + $0x10] sm:$0xff]  ;;  %s640_s5 = sshll.u32 %s1379_s15, 2 }
  0x6c   : > { %761 = vmatprep.subr.mxu0 %v292_v2  ;;  %815 = vmatprep.subr.mxu1 %v292_v2  ;;  %v280_v14 = vld [vmem:[%s1261_s7 + $0x8] sm:$0xff]  ;;  %v279_v15 = vld [vmem:[%s1261_s7] sm:$0xff]  ;;  %v265_v20 = vld [vmem:[%s1254_s26 + $0x10] sm:$0xff]  ;;  %s1307_s24 = scalar_lea.vmem %s1343_s4, %s640_s5 }
  0x6d   : > { %762 = vmatpush3.msra.mxu0 %v292_v2  ;;  %831 = vmatpush3.msra.mxu1 %v292_v2  ;;  %v263_v16 = vld [vmem:[%s1254_s26] sm:$0xff]  ;;  %v264_v18 = vld [vmem:[%s1254_s26 + $0x8] sm:$0xff]  ;;  %v273_v21 = vld [vmem:[%s1254_s26 + $0x50] sm:$0xff]  ;;  %p253_p4 = scmp.lt.s32.totalorder %s252_s30, 1 }
  0x6e   : > { %763 = vmatprep.subr.mxu0 %v291_v3  ;;  %816 = vmatprep.subr.mxu1 %v291_v3  ;;  %v271_v17 = vld [vmem:[%s1254_s26 + $0x40] sm:$0xff]  ;;  %v272_v19 = vld [vmem:[%s1254_s26 + $0x48] sm:$0xff]  ;;  %v266_v22 = vld [vmem:[%s1254_s26 + $0x18] sm:$0xff] }
  0x6f   : > { %764 = vmatpush3.msra.mxu0 %v291_v3  ;;  %832 = vmatpush3.msra.mxu1 %v291_v3  ;;  %v274_v23 = vld [vmem:[%s1254_s26 + $0x58] sm:$0xff]  ;;  %v267_v24 = vld [vmem:[%s1254_s26 + $0x20] sm:$0xff]  ;;  %v268_v26 = vld [vmem:[%s1254_s26 + $0x28] sm:$0xff]  ;;  %s1377_s30 = smov (!%p253_p4, %s252_s30), 1 }
  0x70   : > { %765 = vmatprep.subr.mxu0 %v290_v4  ;;  %817 = vmatprep.subr.mxu1 %v290_v4  ;;  %v275_v25 = vld [vmem:[%s1254_s26 + $0x60] sm:$0xff]  ;;  %v276_v27 = vld [vmem:[%s1254_s26 + $0x68] sm:$0xff]  ;;  %v269_v28 = vld [vmem:[%s1254_s26 + $0x30] sm:$0xff]  ;;  %s255_s10 = scalar_lea.vmem %s1342_s3, %s1377_s30 }
  0x71   : > { %766 = vmatpush3.msra.mxu0 %v290_v4  ;;  %833 = vmatpush3.msra.mxu1 %v290_v4  ;;  %v277_v29 = vld [vmem:[%s1254_s26 + $0x70] sm:$0xff]  ;;  %v270_v30 = vld [vmem:[%s1254_s26 + $0x38] sm:$0xff]  ;;  %v641_v33 = vld [vmem:[%s255_s10] ss:$0 sm:$0xff] }
  0x72   : > { %767 = vmatprep.subr.mxu0 %v289_v5  ;;  %818 = vmatprep.subr.mxu1 %v289_v5  ;;  %v278_v31 = vld [vmem:[%s1254_s26 + $0x78] sm:$0xff] }
  0x73   : > { %768 = vmatpush3.msra.mxu0 %v289_v5  ;;  %834 = vmatpush3.msra.mxu1 %v289_v5 }
  0x74   : > { %769 = vmatprep.subr.mxu0 %v288_v6  ;;  %819 = vmatprep.subr.mxu1 %v288_v6 }
  0x75   : > { %770 = vmatpush3.msra.mxu0 %v288_v6  ;;  %835 = vmatpush3.msra.mxu1 %v288_v6 }
  0x76   : > { %771 = vmatprep.subr.mxu0 %v287_v7  ;;  %820 = vmatprep.subr.mxu1 %v287_v7 }
  0x77   : > { %772 = vmatpush3.msra.mxu0 %v287_v7  ;;  %836 = vmatpush3.msra.mxu1 %v287_v7 }
  0x78   : > { %773 = vmatprep.subr.mxu0 %v286_v8  ;;  %821 = vmatprep.subr.mxu1 %v286_v8 }
  0x79   : > { %774 = vmatpush3.msra.mxu0 %v286_v8  ;;  %837 = vmatpush3.msra.mxu1 %v286_v8 }
  0x7a   : > { %775 = vmatprep.subr.mxu0 %v285_v9  ;;  %822 = vmatprep.subr.mxu1 %v285_v9 }
  0x7b   : > { %776 = vmatpush3.msra.mxu0 %v285_v9  ;;  %838 = vmatpush3.msra.mxu1 %v285_v9 }
  0x7c   : > { %777 = vmatprep.subr.mxu0 %v284_v10  ;;  %823 = vmatprep.subr.mxu1 %v284_v10 }
  0x7d   : > { %778 = vmatpush3.msra.mxu0 %v284_v10  ;;  %839 = vmatpush3.msra.mxu1 %v284_v10 }
  0x7e   : > { %779 = vmatprep.subr.mxu0 %v283_v11  ;;  %824 = vmatprep.subr.mxu1 %v283_v11 }
  0x7f   : > { %780 = vmatpush3.msra.mxu0 %v283_v11  ;;  %840 = vmatpush3.msra.mxu1 %v283_v11 }
  0x80   : > { %781 = vmatprep.subr.mxu0 %v282_v12  ;;  %825 = vmatprep.subr.mxu1 %v282_v12 }
  0x81   : > { %782 = vmatpush3.msra.mxu0 %v282_v12  ;;  %841 = vmatpush3.msra.mxu1 %v282_v12 }
  0x82   : > { %783 = vmatprep.subr.mxu0 %v281_v13  ;;  %826 = vmatprep.subr.mxu1 %v281_v13 }
  0x83   : > { %784 = vmatpush3.msra.mxu0 %v281_v13  ;;  %842 = vmatpush3.msra.mxu1 %v281_v13 }
  0x84   : > { %785 = vmatprep.subr.mxu0 %v280_v14  ;;  %827 = vmatprep.subr.mxu1 %v280_v14 }
  0x85   : > { %786 = vmatpush3.msra.mxu0 %v280_v14  ;;  %843 = vmatpush3.msra.mxu1 %v280_v14 }
  0x86   : > { %787 = vmatprep.subr.mxu0 %v279_v15  ;;  %828 = vmatprep.subr.mxu1 %v279_v15 }
  0x87   : > { %788 = vmatpush3.msra.mxu0 %v279_v15  ;;  %844 = vmatpush3.msra.mxu1 %v279_v15 }
  0x88   : > { %789 = vmatprep.mubr.f32.mxu0 %v263_v16  ;;  %801 = vmatprep.mubr.f32.mxu1 %v271_v17 }
  0x89   : > { %790 = vmatmul.mubr.f32.vlgmr.msra.gmra.mxu0 %v264_v18  ;;  %802 = vmatmul.mubr.f32.vlgmr.msra.gmra.mxu1 %v272_v19 }
  0x8a   : > { %792 = vmatprep.mubr.f32.mxu0 %v265_v20  ;;  %804 = vmatprep.mubr.f32.mxu1 %v273_v21 }
  0x8d   : > { %793 = vmatmul.mubr.f32.gmra.mxu0 %v266_v22  ;;  %805 = vmatmul.mubr.f32.gmra.mxu1 %v274_v23 }
  0x8e   : > { %795 = vmatprep.mubr.f32.mxu0 %v267_v24  ;;  %807 = vmatprep.mubr.f32.mxu1 %v275_v25 }
  0x91   : > { %796 = vmatmul.mubr.f32.gmra.mxu0 %v268_v26  ;;  %808 = vmatmul.mubr.f32.gmra.mxu1 %v276_v27 }
  0x92   : > { %798 = vmatprep.mubr.f32.mxu0 %v269_v28  ;;  %810 = vmatprep.mubr.f32.mxu1 %v277_v29 }
  0x95   : > { %799 = vmatmul.mubr.f32.gmra.mxu0 %v270_v30  ;;  %811 = vmatmul.mubr.f32.gmra.mxu1 %v278_v31 }
 0x149   : > { %v791_v32 = vpop.f32.mrf.mxu0  ;;  %v803_v34 = vpop.f32.mrf.mxu1 }
 0x14a   : > { %v374_v37 = vadd.f32 %v791_v32, %v641_v33  ;;  %v414_v38 = vadd.f32 %v803_v34, %v641_v33 }
 0x14b   : > { %v368_v35 = vpop.f32.mrf.mxu0  ;;  %v408_v36 = vpop.f32.mrf.mxu1 }
 0x14c   : > { %v369_v39 = vadd.f32 %v641_v33, %v368_v35  ;;  %v409_v40 = vadd.f32 %v641_v33, %v408_v36 }
 0x14d   : > { %v794_v41 = vpop.f32.mrf.mxu0  ;;  %v806_v42 = vpop.f32.mrf.mxu1 }
 0x14e   : > { %v681_v43 = vpack.c.bf16 %v374_v37, %v369_v39  ;;  %v701_v44 = vpack.c.bf16 %v414_v38, %v409_v40  ;;  %v384_v47 = vadd.f32 %v794_v41, %v641_v33  ;;  %v424_v48 = vadd.f32 %v806_v42, %v641_v33 }
 0x14f   : > { %v378_v45 = vpop.f32.mrf.mxu0  ;;  %v418_v46 = vpop.f32.mrf.mxu1 }
 0x150   : > { %682 = vst [vmem:[%s1307_s24] sm:$0xff] %v681_v43   ;;  %721 = vst [vmem:[%s1307_s24 + $0x20] sm:$0xff] %v701_v44   ;;  %v379_v49 = vadd.f32 %v641_v33, %v378_v45  ;;  %v419_v50 = vadd.f32 %v641_v33, %v418_v46 }
 0x151   : > { %v797_v51 = vpop.f32.mrf.mxu0  ;;  %v809_v52 = vpop.f32.mrf.mxu1 }
 0x152   : > { %v686_v53 = vpack.c.bf16 %v384_v47, %v379_v49  ;;  %v706_v54 = vpack.c.bf16 %v424_v48, %v419_v50  ;;  %v394_v57 = vadd.f32 %v797_v51, %v641_v33  ;;  %v434_v58 = vadd.f32 %v809_v52, %v641_v33 }
 0x153   : > { %v388_v55 = vpop.f32.mrf.mxu0  ;;  %v428_v56 = vpop.f32.mrf.mxu1 }
 0x154   : > { %718 = vst [vmem:[%s1307_s24 + $0x8] sm:$0xff] %v686_v53   ;;  %722 = vst [vmem:[%s1307_s24 + $0x28] sm:$0xff] %v706_v54   ;;  %v389_v59 = vadd.f32 %v641_v33, %v388_v55  ;;  %v429_v60 = vadd.f32 %v641_v33, %v428_v56 }
 0x155   : > { %v800_v61 = vpop.f32.mrf.mxu0  ;;  %v812_v62 = vpop.f32.mrf.mxu1 }
 0x156   : > { %v691_v63 = vpack.c.bf16 %v394_v57, %v389_v59  ;;  %v711_v0 = vpack.c.bf16 %v434_v58, %v429_v60  ;;  %v404_v3 = vadd.f32 %v800_v61, %v641_v33  ;;  %v444_v4 = vadd.f32 %v812_v62, %v641_v33 }
 0x157   : > { %v398_v1 = vpop.f32.mrf.mxu0  ;;  %v438_v2 = vpop.f32.mrf.mxu1 }
 0x158   : > { %719 = vst [vmem:[%s1307_s24 + $0x10] sm:$0xff] %v691_v63   ;;  %723 = vst [vmem:[%s1307_s24 + $0x30] sm:$0xff] %v711_v0   ;;  %v399_v5 = vadd.f32 %v641_v33, %v398_v1  ;;  %v439_v6 = vadd.f32 %v641_v33, %v438_v2 }
 0x15a   : > { %v696_v7 = vpack.c.bf16 %v404_v3, %v399_v5  ;;  %v716_v8 = vpack.c.bf16 %v444_v4, %v439_v6 }
 0x15c   : > { %720 = vst [vmem:[%s1307_s24 + $0x18] sm:$0xff] %v696_v7   ;;  %724 = vst [vmem:[%s1307_s24 + $0x38] sm:$0xff] %v716_v8  }
 0x15d PF: > { %s1364_s29 = smov %s1213_s18  ;;  %p21_p12 = scmp.ge.s32.totalorder %s1120_s25, 6  }
 0x15e   : > { %s1365_s18 = smov %s1028_s19  ;;  %s1366_s19 = smov %s1032_s20 }
 0x15f   : > { %s1367_s20 = smov %s1364_s29  ;;  %s1368_s21 = smov %s1040_s22 }
 0x160   : > { %s1369_s22 = smov %s1044_s23  ;;  %s1370_s23 = smov %s1130_s28 }
 0x161   : > { %s1371_s0 = smov %s1120_s25  ;;  %23 = sbr.rel (!%p21_p12) target bundleno = 12 (0xc), region = 88 }
 0x166   :  { %549 = vsyncpa [#allocation5], 1 }
 0x167   :  { %551 = vsyncpa [#allocation5 + $0x1], 1 }
 0x168   :  { %552 = vsyncpa [#allocation7], 1 }
 0x169   :  { %554 = vsyncpa [#allocation7 + $0x1], 1 }

// kernel: _forward_padded.5
= control target key start
LH: loop header
LB: loop body
LE: loop exit
PB: predicated region body
PF: predicated region fallthrough
CT: control target
= control target key end

     0   :  { %s1596_s12 = smov 0   ;;  %s1598_s13 = smov 0   ;;  %s1797_s0 = inlined_call_operand.vmem [shape: bf16[512,512], index: 0, kind: input, shape index: {}]   ;;  %s1798_s1 = inlined_call_operand.vmem [shape: bf16[512,128], index: 1, kind: input, shape index: {}]   ;;  %s1799_s2 = inlined_call_operand.vmem [shape: f32[1,128], index: 2, kind: input, shape index: {}]   ;;  %s1800_s3 = inlined_call_operand.vmem [shape: bf16[512,128], index: 3, kind: output, shape index: {}]  }
   0x1   :  { %s1600_s14 = smov 0  }
   0x2 LB: > { %s25_s15 = sadd.s32 1, %s1570_s13  ;;  %p1167_p0 = scmp.ge.s32.totalorder %s1574_s14, 1  ;;  %s1574_s14 = sphi %s1600_s14, %s13_s14   ;;  %s1570_s13 = sphi %s1598_s13, %s1802_s13   ;;  %s1566_s12 = sphi %s1596_s12, %s1801_s12  }
   0x3   : > { %p27_p1 = scmp.ge.s32.totalorder %s25_s15, 4  ;;  %p169_p2 = scmp.lt.s32.totalorder %s1574_s14, 5 }
   0x5   : > { %s1804_s15 = smov (%p27_p1, %s25_s15), 0  ;;  %p170_p3 = pnand %p1167_p0, %p169_p2 }
   0x6   : > { %s1168_s25 = sshll.u32 (!%p170_p3), %s1566_s12, 4 }
   0x7   : > { %173 = sbr.rel (%p170_p3) target bundleno = 313 (0x139), region = 32  ;;  %p205_p4 = scmp.lt.s32.totalorder (!%p170_p3), %s1168_s25, 63 }
   0xc   : > { %v1472_v0 = vld [vmem:[%s1798_s1 + $0x78] sm:$0xff]   ;;  %v1476_v4 = vld [vmem:[%s1798_s1 + $0x70] sm:$0xff]   ;;  %v1480_v8 = vld [vmem:[%s1798_s1 + $0x68] sm:$0xff]   ;;  %s1806_s25 = smov (!%p205_p4, %s1168_s25), 63 }
   0xd   : > { %v1473_v1 = vld [vmem:[%s1798_s1 + $0xf8] sm:$0xff]   ;;  %1320 = vmatprep.subr.bf16.mxu0 %v1472_v0  ;;  %v1477_v5 = vld [vmem:[%s1798_s1 + $0xf0] sm:$0xff]   ;;  %v1481_v9 = vld [vmem:[%s1798_s1 + $0xe8] sm:$0xff]   ;;  %s1256_s24 = sshll.u32 %s1806_s25, 4  ;;  %s1172_s17 = sshll.u32 %s1806_s25, 2 }
   0xe   : > { %v1474_v2 = vld [vmem:[%s1798_s1 + $0x38] sm:$0xff]   ;;  %1384 = vmatprep.subr.bf16.mxu1 %v1473_v1  ;;  %v1478_v6 = vld [vmem:[%s1798_s1 + $0x30] sm:$0xff]   ;;  %v1482_v10 = vld [vmem:[%s1798_s1 + $0x28] sm:$0xff]   ;;  %s1713_s12 = scalar_lea.vmem %s1797_s0, %s1256_s24  ;;  %s1764_s20 = scalar_lea.vmem %s1800_s3, %s1172_s17 }
   0xf   : > { %v1475_v3 = vld [vmem:[%s1798_s1 + $0xb8] sm:$0xff]   ;;  %1321 = vmatpush3.bf16.msra.mxu0 %v1474_v2  ;;  %v1479_v7 = vld [vmem:[%s1798_s1 + $0xb0] sm:$0xff]   ;;  %v1483_v11 = vld [vmem:[%s1798_s1 + $0xa8] sm:$0xff]  }
  0x10   : > { %1385 = vmatpush3.bf16.msra.mxu1 %v1475_v3  ;;  %1322 = vmatprep.subr.bf16.mxu0 %v1476_v4  ;;  %v1484_v12 = vld [vmem:[%s1798_s1 + $0x60] sm:$0xff]   ;;  %v1488_v16 = vld [vmem:[%s1798_s1 + $0x58] sm:$0xff]   ;;  %v1492_v20 = vld [vmem:[%s1798_s1 + $0x50] sm:$0xff]  }
  0x11   : > { %1386 = vmatprep.subr.bf16.mxu1 %v1477_v5  ;;  %v1485_v13 = vld [vmem:[%s1798_s1 + $0xe0] sm:$0xff]   ;;  %v1489_v17 = vld [vmem:[%s1798_s1 + $0xd8] sm:$0xff]   ;;  %v1493_v21 = vld [vmem:[%s1798_s1 + $0xd0] sm:$0xff]  }
  0x12   : > { %v1486_v14 = vld [vmem:[%s1798_s1 + $0x20] sm:$0xff]   ;;  %v1490_v18 = vld [vmem:[%s1798_s1 + $0x18] sm:$0xff]   ;;  %v1494_v22 = vld [vmem:[%s1798_s1 + $0x10] sm:$0xff]  }
  0x13   : > { %1323 = vmatpush3.bf16.msra.mxu0 %v1478_v6  ;;  %v1487_v15 = vld [vmem:[%s1798_s1 + $0xa0] sm:$0xff]   ;;  %v1491_v19 = vld [vmem:[%s1798_s1 + $0x98] sm:$0xff]   ;;  %v1495_v23 = vld [vmem:[%s1798_s1 + $0x90] sm:$0xff]  }
  0x14   : > { %1387 = vmatpush3.bf16.msra.mxu1 %v1479_v7  ;;  %1324 = vmatprep.subr.bf16.mxu0 %v1480_v8  ;;  %v1496_v24 = vld [vmem:[%s1798_s1 + $0x48] sm:$0xff]   ;;  %v1500_v28 = vld [vmem:[%s1798_s1 + $0x40] sm:$0xff]  }
  0x15   : > { %1388 = vmatprep.subr.bf16.mxu1 %v1481_v9  ;;  %v1497_v25 = vld [vmem:[%s1798_s1 + $0xc8] sm:$0xff]   ;;  %v1501_v29 = vld [vmem:[%s1798_s1 + $0xc0] sm:$0xff]  }
  0x16   : > { %v1498_v26 = vld [vmem:[%s1798_s1 + $0x8] sm:$0xff]   ;;  %v1502_v30 = vld [vmem:[%s1798_s1] sm:$0xff]  }
  0x17   : > { %1325 = vmatpush3.bf16.msra.mxu0 %v1482_v10  ;;  %v1499_v27 = vld [vmem:[%s1798_s1 + $0x88] sm:$0xff]   ;;  %v1503_v31 = vld [vmem:[%s1798_s1 + $0x80] sm:$0xff]  }
  0x18   : > { %1389 = vmatpush3.bf16.msra.mxu1 %v1483_v11  ;;  %1326 = vmatprep.subr.bf16.mxu0 %v1484_v12  ;;  %v1504_v32 = vld [vmem:[%s1713_s12] ss:$16 sps:$4 sm:$0xff]   ;;  %v1506_v33 = vld [vmem:[%s1713_s12 + $0x4] ss:$16 sps:$4 sm:$0xff]   ;;  %v1507_v34 = vld [vmem:[%s1713_s12 + $0x8] ss:$16 sps:$4 sm:$0xff]  }
  0x19   : > { %1390 = vmatprep.subr.bf16.mxu1 %v1485_v13  ;;  %v1509_v35 = vld [vmem:[%s1713_s12 + $0xc] ss:$16 sps:$4 sm:$0xff]   ;;  %744 = vmatprep.mubr.bf16.mxu0 %v1506_v33  ;;  %v1510_v36 = vld [vmem:[%s1713_s12 + $0x24] ss:$16 sps:$4 sm:$0xff]   ;;  %v1514_v38 = vld [vmem:[%s1713_s12 + $0x20] ss:$16 sps:$4 sm:$0xff]  }
  0x1a   : > { %841 = vmatprep.mubr.bf16.mxu1 %v1509_v35  ;;  %v1512_v37 = vld [vmem:[%s1713_s12 + $0x2c] ss:$16 sps:$4 sm:$0xff]   ;;  %v1515_v39 = vld [vmem:[%s1713_s12 + $0x28] ss:$16 sps:$4 sm:$0xff]   ;;  %v1516_v40 = vld [vmem:[%s1713_s12 + $0x44] ss:$16 sps:$4 sm:$0xff]  }
  0x1b   : > { %1327 = vmatpush3.bf16.msra.mxu0 %v1486_v14  ;;  %v1518_v41 = vld [vmem:[%s1713_s12 + $0x4c] ss:$16 sps:$4 sm:$0xff]   ;;  %v1520_v42 = vld [vmem:[%s1713_s12 + $0x40] ss:$16 sps:$4 sm:$0xff]   ;;  %v1521_v43 = vld [vmem:[%s1713_s12 + $0x48] ss:$16 sps:$4 sm:$0xff]  }
  0x1c   : > { %1391 = vmatpush3.bf16.msra.mxu1 %v1487_v15  ;;  %1328 = vmatprep.subr.bf16.mxu0 %v1488_v16  ;;  %v1522_v44 = vld [vmem:[%s1713_s12 + $0x64] ss:$16 sps:$4 sm:$0xff]   ;;  %v1524_v45 = vld [vmem:[%s1713_s12 + $0x6c] ss:$16 sps:$4 sm:$0xff]   ;;  %v1526_v46 = vld [vmem:[%s1713_s12 + $0x60] ss:$16 sps:$4 sm:$0xff]  }
  0x1d   : > { %1392 = vmatprep.subr.bf16.mxu1 %v1489_v17  ;;  %v1527_v47 = vld [vmem:[%s1713_s12 + $0x68] ss:$16 sps:$4 sm:$0xff]   ;;  %v1528_v48 = vld [vmem:[%s1713_s12 + $0x84] ss:$16 sps:$4 sm:$0xff]   ;;  %v1530_v49 = vld [vmem:[%s1713_s12 + $0x8c] ss:$16 sps:$4 sm:$0xff]  }
  0x1e   : > { %v1532_v50 = vld [vmem:[%s1713_s12 + $0x80] ss:$16 sps:$4 sm:$0xff]   ;;  %v1533_v51 = vld [vmem:[%s1713_s12 + $0x88] ss:$16 sps:$4 sm:$0xff]   ;;  %v1534_v52 = vld [vmem:[%s1713_s12 + $0xa4] ss:$16 sps:$4 sm:$0xff]  }
  0x1f   : > { %1329 = vmatpush3.bf16.msra.mxu0 %v1490_v18  ;;  %v1536_v53 = vld [vmem:[%s1713_s12 + $0xac] ss:$16 sps:$4 sm:$0xff]   ;;  %v1538_v54 = vld [vmem:[%s1713_s12 + $0xa0] ss:$16 sps:$4 sm:$0xff]   ;;  %v1539_v55 = vld [vmem:[%s1713_s12 + $0xa8] ss:$16 sps:$4 sm:$0xff]  }
  0x20   : > { %1393 = vmatpush3.bf16.msra.mxu1 %v1491_v19  ;;  %1330 = vmatprep.subr.bf16.mxu0 %v1492_v20  ;;  %v1540_v56 = vld [vmem:[%s1713_s12 + $0xc4] ss:$16 sps:$4 sm:$0xff]   ;;  %v1542_v57 = vld [vmem:[%s1713_s12 + $0xcc] ss:$16 sps:$4 sm:$0xff]   ;;  %v1544_v58 = vld [vmem:[%s1713_s12 + $0xc0] ss:$16 sps:$4 sm:$0xff]  }
  0x21   : > { %1394 = vmatprep.subr.bf16.mxu1 %v1493_v21  ;;  %v1545_v59 = vld [vmem:[%s1713_s12 + $0xc8] ss:$16 sps:$4 sm:$0xff]   ;;  %v1546_v60 = vld [vmem:[%s1713_s12 + $0xe4] ss:$16 sps:$4 sm:$0xff]   ;;  %v1548_v61 = vld [vmem:[%s1713_s12 + $0xec] ss:$16 sps:$4 sm:$0xff]  }
  0x22   : > { %v1550_v62 = vld [vmem:[%s1713_s12 + $0xe0] ss:$16 sps:$4 sm:$0xff]   ;;  %v1551_v63 = vld [vmem:[%s1713_s12 + $0xe8] ss:$16 sps:$4 sm:$0xff]  }
  0x23   : > { %1331 = vmatpush3.bf16.msra.mxu0 %v1494_v22  ;;  %v1756_v10 = vld [vmem:[%s1799_s2] ss:$0 sm:$0xff] }
  0x24   : > { %1395 = vmatpush3.bf16.msra.mxu1 %v1495_v23  ;;  %1332 = vmatprep.subr.bf16.mxu0 %v1496_v24 }
  0x25   : > { %1396 = vmatprep.subr.bf16.mxu1 %v1497_v25 }
  0x27   : > { %1333 = vmatpush3.bf16.msra.mxu0 %v1498_v26 }
  0x28   : > { %1397 = vmatpush3.bf16.msra.mxu1 %v1499_v27  ;;  %1334 = vmatprep.subr.bf16.mxu0 %v1500_v28 }
  0x29   : > { %1398 = vmatprep.subr.bf16.mxu1 %v1501_v29 }
  0x2b   : > { %1335 = vmatpush3.bf16.msra.mxu0 %v1502_v30 }
  0x2c   : > { %1399 = vmatpush3.bf16.msra.mxu1 %v1503_v31 }
  0x2e   : > { %745 = vmatmul.mubr.bf16.vlgmr.msra.gmra.mxu0 %v1504_v32 }
  0x2f   : > { %842 = vmatmul.mubr.bf16.vlgmr.msra.gmra.mxu1 %v1507_v34  ;;  %752 = vmatprep.mubr.bf16.mxu0 %v1510_v36 }
  0x30   : > { %849 = vmatprep.mubr.bf16.mxu1 %v1512_v37 }
  0x36   : > { %753 = vmatmul.mubr.bf16.gmra.mxu0 %v1514_v38 }
  0x37   : > { %850 = vmatmul.mubr.bf16.gmra.mxu1 %v1515_v39  ;;  %760 = vmatprep.mubr.bf16.mxu0 %v1516_v40 }
  0x38   : > { %857 = vmatprep.mubr.bf16.mxu1 %v1518_v41 }
  0x3e   : > { %761 = vmatmul.mubr.bf16.gmra.mxu0 %v1520_v42 }
  0x3f   : > { %858 = vmatmul.mubr.bf16.gmra.mxu1 %v1521_v43  ;;  %768 = vmatprep.mubr.bf16.mxu0 %v1522_v44 }
  0x40   : > { %865 = vmatprep.mubr.bf16.mxu1 %v1524_v45 }
  0x46   : > { %769 = vmatmul.mubr.bf16.gmra.mxu0 %v1526_v46 }
  0x47   : > { %866 = vmatmul.mubr.bf16.gmra.mxu1 %v1527_v47  ;;  %776 = vmatprep.mubr.bf16.mxu0 %v1528_v48 }
  0x48   : > { %873 = vmatprep.mubr.bf16.mxu1 %v1530_v49 }
  0x4e   : > { %777 = vmatmul.mubr.bf16.gmra.mxu0 %v1532_v50 }
  0x4f   : > { %874 = vmatmul.mubr.bf16.gmra.mxu1 %v1533_v51  ;;  %784 = vmatprep.mubr.bf16.mxu0 %v1534_v52 }
  0x50   : > { %881 = vmatprep.mubr.bf16.mxu1 %v1536_v53 }
  0x56   : > { %785 = vmatmul.mubr.bf16.gmra.mxu0 %v1538_v54 }
  0x57   : > { %882 = vmatmul.mubr.bf16.gmra.mxu1 %v1539_v55  ;;  %792 = vmatprep.mubr.bf16.mxu0 %v1540_v56 }
  0x58   : > { %889 = vmatprep.mubr.bf16.mxu1 %v1542_v57 }
  0x5e   : > { %793 = vmatmul.mubr.bf16.gmra.mxu0 %v1544_v58 }
  0x5f   : > { %890 = vmatmul.mubr.bf16.gmra.mxu1 %v1545_v59  ;;  %800 = vmatprep.mubr.bf16.mxu0 %v1546_v60 }
  0x60   : > { %897 = vmatprep.mubr.bf16.mxu1 %v1548_v61 }
  0x66   : > { %801 = vmatmul.mubr.bf16.gmra.mxu0 %v1550_v62 }
  0x67   : > { %898 = vmatmul.mubr.bf16.gmra.mxu1 %v1551_v63 }
  0xee   : > { %v1336_v0 = vpop.f32.mrf.mxu0 }
  0xef   : > { %v1400_v1 = vpop.f32.mrf.mxu1 }
  0xf0   : > { %v1337_v2 = vpop.f32.mrf.mxu0 }
  0xf1   : > { %v1338_v3 = vadd.f32 %v1337_v2, %v1336_v0  ;;  %v1401_v4 = vpop.f32.mrf.mxu1 }
  0xf2   : > { %v1402_v5 = vadd.f32 %v1401_v4, %v1400_v1  ;;  %v1339_v6 = vpop.f32.mrf.mxu0 }
  0xf3   : > { %v1403_v7 = vpop.f32.mrf.mxu1 }
  0xf4   : > { %v844_v8 = vadd.f32 %v1402_v5, %v1338_v3  ;;  %v1340_v9 = vpop.f32.mrf.mxu0 }
  0xf5   : > { %v1341_v11 = vadd.f32 %v1340_v9, %v1339_v6  ;;  %v1404_v12 = vpop.f32.mrf.mxu1 }
  0xf6   : > { %v1405_v13 = vadd.f32 %v1404_v12, %v1403_v7  ;;  %v1342_v14 = vpop.f32.mrf.mxu0  ;;  %v964_v16 = vadd.f32 %v1756_v10, %v844_v8 }
  0xf7   : > { %v1406_v15 = vpop.f32.mrf.mxu1 }
  0xf8   : > { %v847_v17 = vadd.f32 %v1405_v13, %v1341_v11  ;;  %v1343_v18 = vpop.f32.mrf.mxu0  ;;  %v980_v25 = vmax.f32 %v964_v16, 0.0 }
  0xf9   : > { %v1344_v19 = vadd.f32 %v1343_v18, %v1342_v14  ;;  %v1407_v20 = vpop.f32.mrf.mxu1 }
  0xfa   : > { %v965_v21 = vadd.f32 %v1756_v10, %v847_v17  ;;  %v1408_v22 = vadd.f32 %v1407_v20, %v1406_v15  ;;  %v1345_v23 = vpop.f32.mrf.mxu0 }
  0xfb   : > { %v1409_v24 = vpop.f32.mrf.mxu1 }
  0xfc   : > { %v981_v26 = vmax.f32 %v965_v21, 0.0  ;;  %v852_v27 = vadd.f32 %v1408_v22, %v1344_v19  ;;  %v1346_v28 = vpop.f32.mrf.mxu0 }
  0xfd   : > { %v1347_v29 = vadd.f32 %v1346_v28, %v1345_v23  ;;  %v1410_v30 = vpop.f32.mrf.mxu1 }
  0xfe   : > { %v1276_v31 = vpack.c.bf16 %v981_v26, %v980_v25  ;;  %v1411_v32 = vadd.f32 %v1410_v30, %v1409_v24  ;;  %v1348_v33 = vpop.f32.mrf.mxu0  ;;  %v966_v35 = vadd.f32 %v1756_v10, %v852_v27 }
  0xff   : > { %v1412_v34 = vpop.f32.mrf.mxu1 }
 0x100   : > { %1277 = vst [vmem:[%s1764_s20] sm:$0xff] %v1276_v31   ;;  %v855_v36 = vadd.f32 %v1411_v32, %v1347_v29  ;;  %v1349_v37 = vpop.f32.mrf.mxu0  ;;  %v982_v44 = vmax.f32 %v966_v35, 0.0 }
 0x101   : > { %v1350_v38 = vadd.f32 %v1349_v37, %v1348_v33  ;;  %v1413_v39 = vpop.f32.mrf.mxu1 }
 0x102   : > { %v967_v40 = vadd.f32 %v1756_v10, %v855_v36  ;;  %v1414_v41 = vadd.f32 %v1413_v39, %v1412_v34  ;;  %v1351_v42 = vpop.f32.mrf.mxu0 }
 0x103   : > { %v1415_v43 = vpop.f32.mrf.mxu1 }
 0x104   : > { %v983_v45 = vmax.f32 %v967_v40, 0.0  ;;  %v860_v46 = vadd.f32 %v1414_v41, %v1350_v38  ;;  %v1352_v47 = vpop.f32.mrf.mxu0 }
 0x105   : > { %v1353_v48 = vadd.f32 %v1352_v47, %v1351_v42  ;;  %v1416_v49 = vpop.f32.mrf.mxu1 }
 0x106   : > { %v1281_v50 = vpack.c.bf16 %v983_v45, %v982_v44  ;;  %v1417_v51 = vadd.f32 %v1416_v49, %v1415_v43  ;;  %v1354_v52 = vpop.f32.mrf.mxu0  ;;  %v968_v54 = vadd.f32 %v1756_v10, %v860_v46 }
 0x107   : > { %v1418_v53 = vpop.f32.mrf.mxu1 }
 0x108   : > { %1313 = vst [vmem:[%s1764_s20 + $0x8] sm:$0xff] %v1281_v50   ;;  %v863_v55 = vadd.f32 %v1417_v51, %v1353_v48  ;;  %v1355_v56 = vpop.f32.mrf.mxu0  ;;  %v984_v63 = vmax.f32 %v968_v54, 0.0 }
 0x109   : > { %v1356_v57 = vadd.f32 %v1355_v56, %v1354_v52  ;;  %v1419_v58 = vpop.f32.mrf.mxu1 }
 0x10a   : > { %v969_v59 = vadd.f32 %v1756_v10, %v863_v55  ;;  %v1420_v60 = vadd.f32 %v1419_v58, %v1418_v53  ;;  %v1357_v61 = vpop.f32.mrf.mxu0 }
 0x10b   : > { %v1421_v62 = vpop.f32.mrf.mxu1 }
 0x10c   : > { %v985_v0 = vmax.f32 %v969_v59, 0.0  ;;  %v868_v1 = vadd.f32 %v1420_v60, %v1356_v57  ;;  %v1358_v2 = vpop.f32.mrf.mxu0 }
 0x10d   : > { %v1359_v3 = vadd.f32 %v1358_v2, %v1357_v61  ;;  %v1422_v4 = vpop.f32.mrf.mxu1 }
 0x10e   : > { %v1286_v5 = vpack.c.bf16 %v985_v0, %v984_v63  ;;  %v1423_v6 = vadd.f32 %v1422_v4, %v1421_v62  ;;  %v1360_v7 = vpop.f32.mrf.mxu0  ;;  %v970_v9 = vadd.f32 %v1756_v10, %v868_v1 }
 0x10f   : > { %v1424_v8 = vpop.f32.mrf.mxu1 }
 0x110   : > { %1314 = vst [vmem:[%s1764_s20 + $0x10] sm:$0xff] %v1286_v5   ;;  %v871_v11 = vadd.f32 %v1423_v6, %v1359_v3  ;;  %v1361_v12 = vpop.f32.mrf.mxu0  ;;  %v986_v19 = vmax.f32 %v970_v9, 0.0 }
 0x111   : > { %v1362_v13 = vadd.f32 %v1361_v12, %v1360_v7  ;;  %v1425_v14 = vpop.f32.mrf.mxu1 }
 0x112   : > { %v971_v15 = vadd.f32 %v1756_v10, %v871_v11  ;;  %v1426_v16 = vadd.f32 %v1425_v14, %v1424_v8  ;;  %v1363_v17 = vpop.f32.mrf.mxu0 }
 0x113   : > { %v1427_v18 = vpop.f32.mrf.mxu1 }
 0x114   : > { %v987_v20 = vmax.f32 %v971_v15, 0.0  ;;  %v876_v21 = vadd.f32 %v1426_v16, %v1362_v13  ;;  %v1364_v22 = vpop.f32.mrf.mxu0 }
 0x115   : > { %v1365_v23 = vadd.f32 %v1364_v22, %v1363_v17  ;;  %v1428_v24 = vpop.f32.mrf.mxu1 }
 0x116   : > { %v1291_v25 = vpack.c.bf16 %v987_v20, %v986_v19  ;;  %v1429_v26 = vadd.f32 %v1428_v24, %v1427_v18  ;;  %v1366_v27 = vpop.f32.mrf.mxu0  ;;  %v972_v29 = vadd.f32 %v1756_v10, %v876_v21 }
 0x117   : > { %v1430_v28 = vpop.f32.mrf.mxu1 }
 0x118   : > { %1315 = vst [vmem:[%s1764_s20 + $0x18] sm:$0xff] %v1291_v25   ;;  %v879_v30 = vadd.f32 %v1429_v26, %v1365_v23  ;;  %v1367_v31 = vpop.f32.mrf.mxu0  ;;  %v988_v38 = vmax.f32 %v972_v29, 0.0 }
 0x119   : > { %v1368_v32 = vadd.f32 %v1367_v31, %v1366_v27  ;;  %v1431_v33 = vpop.f32.mrf.mxu1 }
 0x11a   : > { %v973_v34 = vadd.f32 %v1756_v10, %v879_v30  ;;  %v1432_v35 = vadd.f32 %v1431_v33, %v1430_v28  ;;  %v1369_v36 = vpop.f32.mrf.mxu0 }
 0x11b   : > { %v1433_v37 = vpop.f32.mrf.mxu1 }
 0x11c   : > { %v989_v39 = vmax.f32 %v973_v34, 0.0  ;;  %v884_v40 = vadd.f32 %v1432_v35, %v1368_v32  ;;  %v1370_v41 = vpop.f32.mrf.mxu0 }
 0x11d   : > { %v1371_v42 = vadd.f32 %v1370_v41, %v1369_v36  ;;  %v1434_v43 = vpop.f32.mrf.mxu1 }
 0x11e   : > { %v1296_v44 = vpack.c.bf16 %v989_v39, %v988_v38  ;;  %v1435_v45 = vadd.f32 %v1434_v43, %v1433_v37  ;;  %v1372_v46 = vpop.f32.mrf.mxu0  ;;  %v974_v48 = vadd.f32 %v1756_v10, %v884_v40 }
 0x11f   : > { %v1436_v47 = vpop.f32.mrf.mxu1 }
 0x120   : > { %1316 = vst [vmem:[%s1764_s20 + $0x20] sm:$0xff] %v1296_v44   ;;  %v887_v49 = vadd.f32 %v1435_v45, %v1371_v42  ;;  %v1373_v50 = vpop.f32.mrf.mxu0  ;;  %v990_v57 = vmax.f32 %v974_v48, 0.0 }
 0x121   : > { %v1374_v51 = vadd.f32 %v1373_v50, %v1372_v46  ;;  %v1437_v52 = vpop.f32.mrf.mxu1 }
 0x122   : > { %v975_v53 = vadd.f32 %v1756_v10, %v887_v49  ;;  %v1438_v54 = vadd.f32 %v1437_v52, %v1436_v47  ;;  %v1375_v55 = vpop.f32.mrf.mxu0 }
 0x123   : > { %v1439_v56 = vpop.f32.mrf.mxu1 }
 0x124   : > { %v991_v58 = vmax.f32 %v975_v53, 0.0  ;;  %v892_v59 = vadd.f32 %v1438_v54, %v1374_v51  ;;  %v1376_v60 = vpop.f32.mrf.mxu0 }
 0x125   : > { %v1377_v61 = vadd.f32 %v1376_v60, %v1375_v55  ;;  %v1440_v62 = vpop.f32.mrf.mxu1 }
 0x126   : > { %v1301_v63 = vpack.c.bf16 %v991_v58, %v990_v57  ;;  %v1441_v0 = vadd.f32 %v1440_v62, %v1439_v56  ;;  %v1378_v1 = vpop.f32.mrf.mxu0  ;;  %v976_v3 = vadd.f32 %v1756_v10, %v892_v59 }
 0x127   : > { %v1442_v2 = vpop.f32.mrf.mxu1 }
 0x128   : > { %1317 = vst [vmem:[%s1764_s20 + $0x28] sm:$0xff] %v1301_v63   ;;  %v895_v4 = vadd.f32 %v1441_v0, %v1377_v61  ;;  %v1379_v5 = vpop.f32.mrf.mxu0  ;;  %v992_v13 = vmax.f32 %v976_v3, 0.0 }
 0x129   : > { %v1380_v6 = vadd.f32 %v1379_v5, %v1378_v1  ;;  %v1443_v7 = vpop.f32.mrf.mxu1 }
 0x12a   : > { %v977_v8 = vadd.f32 %v1756_v10, %v895_v4  ;;  %v1444_v9 = vadd.f32 %v1443_v7, %v1442_v2  ;;  %v1381_v11 = vpop.f32.mrf.mxu0 }
 0x12b   : > { %v1445_v12 = vpop.f32.mrf.mxu1 }
 0x12c   : > { %v993_v14 = vmax.f32 %v977_v8, 0.0  ;;  %v900_v15 = vadd.f32 %v1444_v9, %v1380_v6  ;;  %v1382_v16 = vpop.f32.mrf.mxu0 }
 0x12d   : > { %v1383_v17 = vadd.f32 %v1382_v16, %v1381_v11  ;;  %v1446_v18 = vpop.f32.mrf.mxu1 }
 0x12e   : > { %v1306_v19 = vpack.c.bf16 %v993_v14, %v992_v13  ;;  %v1447_v20 = vadd.f32 %v1446_v18, %v1445_v12  ;;  %v978_v21 = vadd.f32 %v1756_v10, %v900_v15 }
 0x130   : > { %1318 = vst [vmem:[%s1764_s20 + $0x30] sm:$0xff] %v1306_v19   ;;  %v903_v22 = vadd.f32 %v1447_v20, %v1383_v17  ;;  %v994_v24 = vmax.f32 %v978_v21, 0.0 }
 0x132   : > { %v979_v23 = vadd.f32 %v1756_v10, %v903_v22 }
 0x134   : > { %v995_v25 = vmax.f32 %v979_v23, 0.0 }
 0x136   : > { %v1311_v26 = vpack.c.bf16 %v995_v25, %v994_v24 }
 0x138   : > { %1319 = vst [vmem:[%s1764_s20 + $0x38] sm:$0xff] %v1311_v26  }
 0x139 PF: > { %s13_s14 = sadd.s32 1, %s1574_s14   ;;  %s1801_s12 = smov %s1570_s13 }
 0x13a   : > { %p10_p5 = scmp.ge.s32.totalorder %s13_s14, 6   ;;  %s1802_s13 = smov %s1804_s15 }
 0x13c   :  { %12 = sbr.rel (!%p10_p5) target bundleno = 2 (0x2), region = 73 }

// kernel: _forward_padded.6
= control target key start
LH: loop header
LB: loop body
LE: loop exit
PB: predicated region body
PF: predicated region fallthrough
CT: control target
= control target key end

     0   :  { %s1861_s15 = smov 0   ;;  %s1863_s16 = smov 0   ;;  %s2068_s0 = inlined_call_operand.vmem [shape: bf16[512,512], index: 0, kind: input, shape index: {}]   ;;  %s2069_s1 = inlined_call_operand.vmem [shape: bf16[512,128], index: 1, kind: input, shape index: {}]   ;;  %s2070_s2 = inlined_call_operand.vmem [shape: bf16[128,128], index: 2, kind: input, shape index: {}]   ;;  %s2071_s3 = inlined_call_operand.vmem [shape: f32[1,128], index: 3, kind: input, shape index: {}]   ;;  %s2072_s4 = inlined_call_operand.vmem [shape: bf16[512,128], index: 4, kind: output, shape index: {}]  }
   0x1   :  { %s1865_s17 = smov 0  }
   0x2 LB: > { %s26_s18 = sadd.s32 1, %s1830_s16  ;;  %p1347_p0 = scmp.ge.s32.totalorder %s1834_s17, 1  ;;  %s1834_s17 = sphi %s1865_s17, %s14_s17   ;;  %s1830_s16 = sphi %s1863_s16, %s2074_s16   ;;  %s1826_s15 = sphi %s1861_s15, %s2073_s15  }
   0x3   : > { %p28_p1 = scmp.ge.s32.totalorder %s26_s18, 4  ;;  %p194_p2 = scmp.lt.s32.totalorder %s1834_s17, 5 }
   0x5   : > { %s2076_s18 = smov (%p28_p1, %s26_s18), 0  ;;  %p195_p3 = pnand %p1347_p0, %p194_p2 }
   0x6   : > { %s1348_s29 = sshll.u32 (!%p195_p3), %s1826_s15, 4 }
   0x7   : > { %198 = sbr.rel (%p195_p3) target bundleno = 514 (0x202), region = 36  ;;  %p232_p4 = scmp.lt.s32.totalorder (!%p195_p3), %s1348_s29, 63 }
   0xc   : > { %v1724_v0 = vld [vmem:[%s2069_s1 + $0x78] sm:$0xff]   ;;  %v1728_v4 = vld [vmem:[%s2069_s1 + $0x70] sm:$0xff]   ;;  %v1732_v8 = vld [vmem:[%s2069_s1 + $0x68] sm:$0xff]   ;;  %s2078_s29 = smov (!%p232_p4, %s1348_s29), 63 }
   0xd   : > { %v1725_v1 = vld [vmem:[%s2069_s1 + $0xf8] sm:$0xff]   ;;  %1508 = vmatprep.subr.bf16.mxu0 %v1724_v0  ;;  %v1729_v5 = vld [vmem:[%s2069_s1 + $0xf0] sm:$0xff]   ;;  %v1733_v9 = vld [vmem:[%s2069_s1 + $0xe8] sm:$0xff]   ;;  %s1444_s30 = sshll.u32 %s2078_s29, 4  ;;  %s1352_s13 = sshll.u32 %s2078_s29, 2 }
   0xe   : > { %v1726_v2 = vld [vmem:[%s2069_s1 + $0x38] sm:$0xff]   ;;  %1572 = vmatprep.subr.bf16.mxu1 %v1725_v1  ;;  %v1730_v6 = vld [vmem:[%s2069_s1 + $0x30] sm:$0xff]   ;;  %v1734_v10 = vld [vmem:[%s2069_s1 + $0x28] sm:$0xff]   ;;  %s1978_s12 = scalar_lea.vmem %s2068_s0, %s1444_s30  ;;  %s2049_s20 = scalar_lea.vmem %s2072_s4, %s1352_s13 }
   0xf   : > { %v1727_v3 = vld [vmem:[%s2069_s1 + $0xb8] sm:$0xff]   ;;  %1509 = vmatpush3.bf16.msra.mxu0 %v1726_v2  ;;  %v1731_v7 = vld [vmem:[%s2069_s1 + $0xb0] sm:$0xff]   ;;  %v1735_v11 = vld [vmem:[%s2069_s1 + $0xa8] sm:$0xff]  }
  0x10   : > { %1573 = vmatpush3.bf16.msra.mxu1 %v1727_v3  ;;  %1510 = vmatprep.subr.bf16.mxu0 %v1728_v4  ;;  %v1736_v12 = vld [vmem:[%s2069_s1 + $0x60] sm:$0xff]   ;;  %v1740_v16 = vld [vmem:[%s2069_s1 + $0x58] sm:$0xff]   ;;  %v1744_v20 = vld [vmem:[%s2069_s1 + $0x50] sm:$0xff]  }
  0x11   : > { %1574 = vmatprep.subr.bf16.mxu1 %v1729_v5  ;;  %v1737_v13 = vld [vmem:[%s2069_s1 + $0xe0] sm:$0xff]   ;;  %v1741_v17 = vld [vmem:[%s2069_s1 + $0xd8] sm:$0xff]   ;;  %v1745_v21 = vld [vmem:[%s2069_s1 + $0xd0] sm:$0xff]  }
  0x12   : > { %v1738_v14 = vld [vmem:[%s2069_s1 + $0x20] sm:$0xff]   ;;  %v1742_v18 = vld [vmem:[%s2069_s1 + $0x18] sm:$0xff]   ;;  %v1746_v22 = vld [vmem:[%s2069_s1 + $0x10] sm:$0xff]  }
  0x13   : > { %1511 = vmatpush3.bf16.msra.mxu0 %v1730_v6  ;;  %v1739_v15 = vld [vmem:[%s2069_s1 + $0xa0] sm:$0xff]   ;;  %v1743_v19 = vld [vmem:[%s2069_s1 + $0x98] sm:$0xff]   ;;  %v1747_v23 = vld [vmem:[%s2069_s1 + $0x90] sm:$0xff]  }
  0x14   : > { %1575 = vmatpush3.bf16.msra.mxu1 %v1731_v7  ;;  %1512 = vmatprep.subr.bf16.mxu0 %v1732_v8  ;;  %v1748_v24 = vld [vmem:[%s2069_s1 + $0x48] sm:$0xff]   ;;  %v1752_v28 = vld [vmem:[%s2069_s1 + $0x40] sm:$0xff]   ;;  %v1804_v47 = vld [vmem:[%s2070_s2 + $0x38] sm:$0xff]  }
  0x15   : > { %1576 = vmatprep.subr.bf16.mxu1 %v1733_v9  ;;  %v1749_v25 = vld [vmem:[%s2069_s1 + $0xc8] sm:$0xff]   ;;  %v1753_v29 = vld [vmem:[%s2069_s1 + $0xc0] sm:$0xff]   ;;  %v1805_v50 = vld [vmem:[%s2070_s2 + $0x30] sm:$0xff]  }
  0x16   : > { %v1750_v26 = vld [vmem:[%s2069_s1 + $0x8] sm:$0xff]   ;;  %v1754_v30 = vld [vmem:[%s2069_s1] sm:$0xff]   ;;  %v1808_v4 = vld [vmem:[%s2070_s2 + $0x18] sm:$0xff]  }
  0x17   : > { %1513 = vmatpush3.bf16.msra.mxu0 %v1734_v10  ;;  %v1751_v27 = vld [vmem:[%s2069_s1 + $0x88] sm:$0xff]   ;;  %v1755_v31 = vld [vmem:[%s2069_s1 + $0x80] sm:$0xff]   ;;  %v1809_v5 = vld [vmem:[%s2070_s2 + $0x10] sm:$0xff]  }
  0x18   : > { %1577 = vmatpush3.bf16.msra.mxu1 %v1735_v11  ;;  %1514 = vmatprep.subr.bf16.mxu0 %v1736_v12  ;;  %v1756_v32 = vld [vmem:[%s1978_s12] ss:$16 sps:$4 sm:$0xff]   ;;  %v1758_v33 = vld [vmem:[%s1978_s12 + $0x4] ss:$16 sps:$4 sm:$0xff]   ;;  %v1759_v34 = vld [vmem:[%s1978_s12 + $0x8] ss:$16 sps:$4 sm:$0xff]  }
  0x19   : > { %1578 = vmatprep.subr.bf16.mxu1 %v1737_v13  ;;  %v1761_v35 = vld [vmem:[%s1978_s12 + $0xc] ss:$16 sps:$4 sm:$0xff]   ;;  %771 = vmatprep.mubr.bf16.mxu0 %v1758_v33  ;;  %v1762_v36 = vld [vmem:[%s1978_s12 + $0x24] ss:$16 sps:$4 sm:$0xff]   ;;  %v1766_v38 = vld [vmem:[%s1978_s12 + $0x20] ss:$16 sps:$4 sm:$0xff]  }
  0x1a   : > { %868 = vmatprep.mubr.bf16.mxu1 %v1761_v35  ;;  %v1764_v37 = vld [vmem:[%s1978_s12 + $0x2c] ss:$16 sps:$4 sm:$0xff]   ;;  %v1767_v39 = vld [vmem:[%s1978_s12 + $0x28] ss:$16 sps:$4 sm:$0xff]   ;;  %v1768_v40 = vld [vmem:[%s1978_s12 + $0x44] ss:$16 sps:$4 sm:$0xff]  }
  0x1b   : > { %1515 = vmatpush3.bf16.msra.mxu0 %v1738_v14  ;;  %v1770_v41 = vld [vmem:[%s1978_s12 + $0x4c] ss:$16 sps:$4 sm:$0xff]   ;;  %v1772_v42 = vld [vmem:[%s1978_s12 + $0x40] ss:$16 sps:$4 sm:$0xff]   ;;  %v1773_v43 = vld [vmem:[%s1978_s12 + $0x48] ss:$16 sps:$4 sm:$0xff]  }
  0x1c   : > { %1579 = vmatpush3.bf16.msra.mxu1 %v1739_v15  ;;  %1516 = vmatprep.subr.bf16.mxu0 %v1740_v16  ;;  %v1774_v44 = vld [vmem:[%s1978_s12 + $0x64] ss:$16 sps:$4 sm:$0xff]   ;;  %v1776_v45 = vld [vmem:[%s1978_s12 + $0x6c] ss:$16 sps:$4 sm:$0xff]   ;;  %v1778_v46 = vld [vmem:[%s1978_s12 + $0x60] ss:$16 sps:$4 sm:$0xff]  }
  0x1d   : > { %1580 = vmatprep.subr.bf16.mxu1 %v1741_v17  ;;  %v1779_v48 = vld [vmem:[%s1978_s12 + $0x68] ss:$16 sps:$4 sm:$0xff]   ;;  %v1780_v49 = vld [vmem:[%s1978_s12 + $0x84] ss:$16 sps:$4 sm:$0xff]   ;;  %v1782_v51 = vld [vmem:[%s1978_s12 + $0x8c] ss:$16 sps:$4 sm:$0xff]  }
  0x1e   : > { %v1806_v52 = vld [vmem:[%s2070_s2 + $0x28] sm:$0xff]   ;;  %v1784_v53 = vld [vmem:[%s1978_s12 + $0x80] ss:$16 sps:$4 sm:$0xff]   ;;  %v1786_v55 = vld [vmem:[%s1978_s12 + $0xa4] ss:$16 sps:$4 sm:$0xff]  }
  0x1f   : > { %1517 = vmatpush3.bf16.msra.mxu0 %v1742_v18  ;;  %v1785_v54 = vld [vmem:[%s1978_s12 + $0x88] ss:$16 sps:$4 sm:$0xff]   ;;  %v1788_v56 = vld [vmem:[%s1978_s12 + $0xac] ss:$16 sps:$4 sm:$0xff]   ;;  %v1790_v57 = vld [vmem:[%s1978_s12 + $0xa0] ss:$16 sps:$4 sm:$0xff]  }
  0x20   : > { %1581 = vmatpush3.bf16.msra.mxu1 %v1743_v19  ;;  %1518 = vmatprep.subr.bf16.mxu0 %v1744_v20  ;;  %v1791_v58 = vld [vmem:[%s1978_s12 + $0xa8] ss:$16 sps:$4 sm:$0xff]   ;;  %v1792_v59 = vld [vmem:[%s1978_s12 + $0xc4] ss:$16 sps:$4 sm:$0xff]   ;;  %v1794_v60 = vld [vmem:[%s1978_s12 + $0xcc] ss:$16 sps:$4 sm:$0xff]  }
  0x21   : > { %1582 = vmatprep.subr.bf16.mxu1 %v1745_v21  ;;  %v1796_v61 = vld [vmem:[%s1978_s12 + $0xc0] ss:$16 sps:$4 sm:$0xff]   ;;  %v1797_v62 = vld [vmem:[%s1978_s12 + $0xc8] ss:$16 sps:$4 sm:$0xff]   ;;  %v1798_v63 = vld [vmem:[%s1978_s12 + $0xe4] ss:$16 sps:$4 sm:$0xff]  }
  0x22   : > { %v1800_v0 = vld [vmem:[%s1978_s12 + $0xec] ss:$16 sps:$4 sm:$0xff]   ;;  %v1802_v1 = vld [vmem:[%s1978_s12 + $0xe0] ss:$16 sps:$4 sm:$0xff]   ;;  %v1803_v2 = vld [vmem:[%s1978_s12 + $0xe8] ss:$16 sps:$4 sm:$0xff]  }
  0x23   : > { %1519 = vmatpush3.bf16.msra.mxu0 %v1746_v22  ;;  %v1807_v3 = vld [vmem:[%s2070_s2 + $0x20] sm:$0xff]   ;;  %v1810_v6 = vld [vmem:[%s2070_s2 + $0x8] sm:$0xff]  }
  0x24   : > { %1583 = vmatpush3.bf16.msra.mxu1 %v1747_v23  ;;  %1520 = vmatprep.subr.bf16.mxu0 %v1748_v24  ;;  %v1811_v7 = vld [vmem:[%s2070_s2] sm:$0xff]  }
  0x25   : > { %1584 = vmatprep.subr.bf16.mxu1 %v1749_v25 }
  0x27   : > { %1521 = vmatpush3.bf16.msra.mxu0 %v1750_v26 }
  0x28   : > { %1585 = vmatpush3.bf16.msra.mxu1 %v1751_v27  ;;  %1522 = vmatprep.subr.bf16.mxu0 %v1752_v28 }
  0x29   : > { %1586 = vmatprep.subr.bf16.mxu1 %v1753_v29 }
  0x2b   : > { %1523 = vmatpush3.bf16.msra.mxu0 %v1754_v30 }
  0x2c   : > { %1587 = vmatpush3.bf16.msra.mxu1 %v1755_v31  ;;  %1652 = vmatprep.subr.bf16.mxu0 %v1804_v47 }
  0x2d   : > { %1684 = vmatprep.subr.bf16.mxu1 %v1804_v47 }
  0x2e   : > { %772 = vmatmul.mubr.bf16.vlgmr.msra.gmra.mxu0 %v1756_v32 }
  0x2f   : > { %869 = vmatmul.mubr.bf16.vlgmr.msra.gmra.mxu1 %v1759_v34  ;;  %779 = vmatprep.mubr.bf16.mxu0 %v1762_v36 }
  0x30   : > { %876 = vmatprep.mubr.bf16.mxu1 %v1764_v37  ;;  %1653 = vmatpush3.bf16.msra.mxu0 %v1804_v47 }
  0x31   : > { %1692 = vmatpush3.bf16.msra.mxu1 %v1804_v47  ;;  %1654 = vmatprep.subr.bf16.mxu0 %v1805_v50 }
  0x32   : > { %1685 = vmatprep.subr.bf16.mxu1 %v1805_v50 }
  0x34   : > { %1655 = vmatpush3.bf16.msra.mxu0 %v1805_v50 }
  0x35   : > { %1656 = vmatprep.subr.bf16.mxu0 %v1806_v52  ;;  %1693 = vmatpush3.bf16.msra.mxu1 %v1805_v50 }
  0x36   : > { %780 = vmatmul.mubr.bf16.gmra.mxu0 %v1766_v38  ;;  %1686 = vmatprep.subr.bf16.mxu1 %v1806_v52 }
  0x37   : > { %877 = vmatmul.mubr.bf16.gmra.mxu1 %v1767_v39  ;;  %787 = vmatprep.mubr.bf16.mxu0 %v1768_v40 }
  0x38   : > { %884 = vmatprep.mubr.bf16.mxu1 %v1770_v41  ;;  %1657 = vmatpush3.bf16.msra.mxu0 %v1806_v52 }
  0x39   : > { %1694 = vmatpush3.bf16.msra.mxu1 %v1806_v52  ;;  %1658 = vmatprep.subr.bf16.mxu0 %v1807_v3 }
  0x3a   : > { %1687 = vmatprep.subr.bf16.mxu1 %v1807_v3 }
  0x3c   : > { %1659 = vmatpush3.bf16.msra.mxu0 %v1807_v3 }
  0x3d   : > { %1695 = vmatpush3.bf16.msra.mxu1 %v1807_v3  ;;  %1660 = vmatprep.subr.bf16.mxu0 %v1808_v4 }
  0x3e   : > { %788 = vmatmul.mubr.bf16.gmra.mxu0 %v1772_v42  ;;  %1688 = vmatprep.subr.bf16.mxu1 %v1808_v4 }
  0x3f   : > { %885 = vmatmul.mubr.bf16.gmra.mxu1 %v1773_v43  ;;  %795 = vmatprep.mubr.bf16.mxu0 %v1774_v44 }
  0x40   : > { %892 = vmatprep.mubr.bf16.mxu1 %v1776_v45  ;;  %1661 = vmatpush3.bf16.msra.mxu0 %v1808_v4 }
  0x41   : > { %1696 = vmatpush3.bf16.msra.mxu1 %v1808_v4  ;;  %1662 = vmatprep.subr.bf16.mxu0 %v1809_v5 }
  0x42   : > { %1689 = vmatprep.subr.bf16.mxu1 %v1809_v5 }
  0x44   : > { %1663 = vmatpush3.bf16.msra.mxu0 %v1809_v5 }
  0x45   : > { %1697 = vmatpush3.bf16.msra.mxu1 %v1809_v5  ;;  %1664 = vmatprep.subr.bf16.mxu0 %v1810_v6 }
  0x46   : > { %796 = vmatmul.mubr.bf16.gmra.mxu0 %v1778_v46  ;;  %1690 = vmatprep.subr.bf16.mxu1 %v1810_v6 }
  0x47   : > { %893 = vmatmul.mubr.bf16.gmra.mxu1 %v1779_v48  ;;  %803 = vmatprep.mubr.bf16.mxu0 %v1780_v49 }
  0x48   : > { %900 = vmatprep.mubr.bf16.mxu1 %v1782_v51  ;;  %1665 = vmatpush3.bf16.msra.mxu0 %v1810_v6 }
  0x49   : > { %1698 = vmatpush3.bf16.msra.mxu1 %v1810_v6  ;;  %1666 = vmatprep.subr.bf16.mxu0 %v1811_v7 }
  0x4a   : > { %1691 = vmatprep.subr.bf16.mxu1 %v1811_v7 }
  0x4c   : > { %1667 = vmatpush3.bf16.msra.mxu0 %v1811_v7 }
  0x4d   : > { %1699 = vmatpush3.bf16.msra.mxu1 %v1811_v7 }
  0x4e   : > { %804 = vmatmul.mubr.bf16.gmra.mxu0 %v1784_v53 }
  0x4f   : > { %901 = vmatmul.mubr.bf16.gmra.mxu1 %v1785_v54  ;;  %811 = vmatprep.mubr.bf16.mxu0 %v1786_v55 }
  0x50   : > { %908 = vmatprep.mubr.bf16.mxu1 %v1788_v56 }
  0x56   : > { %812 = vmatmul.mubr.bf16.gmra.mxu0 %v1790_v57 }
  0x57   : > { %909 = vmatmul.mubr.bf16.gmra.mxu1 %v1791_v58  ;;  %819 = vmatprep.mubr.bf16.mxu0 %v1792_v59 }
  0x58   : > { %916 = vmatprep.mubr.bf16.mxu1 %v1794_v60 }
  0x5e   : > { %820 = vmatmul.mubr.bf16.gmra.mxu0 %v1796_v61 }
  0x5f   : > { %917 = vmatmul.mubr.bf16.gmra.mxu1 %v1797_v62  ;;  %827 = vmatprep.mubr.bf16.mxu0 %v1798_v63 }
  0x60   : > { %924 = vmatprep.mubr.bf16.mxu1 %v1800_v0 }
  0x66   : > { %828 = vmatmul.mubr.bf16.gmra.mxu0 %v1802_v1 }
  0x67   : > { %925 = vmatmul.mubr.bf16.gmra.mxu1 %v1803_v2 }
  0xee   : > { %v1524_v8 = vpop.f32.mrf.mxu0 }
  0xef   : > { %v1588_v9 = vpop.f32.mrf.mxu1 }
  0xf0   : > { %v1525_v10 = vpop.f32.mrf.mxu0 }
  0xf1   : > { %v1589_v11 = vpop.f32.mrf.mxu1  ;;  %v1526_v14 = vadd.f32 %v1525_v10, %v1524_v8 }
  0xf2   : > { %v1527_v12 = vpop.f32.mrf.mxu0  ;;  %v1590_v15 = vadd.f32 %v1589_v11, %v1588_v9 }
  0xf3   : > { %v1591_v13 = vpop.f32.mrf.mxu1 }
  0xf4   : > { %v1528_v16 = vpop.f32.mrf.mxu0  ;;  %v871_v22 = vadd.f32 %v1590_v15, %v1526_v14 }
  0xf5   : > { %v1529_v17 = vadd.f32 %v1528_v16, %v1527_v12  ;;  %v1592_v18 = vpop.f32.mrf.mxu1 }
  0xf6   : > { %v1593_v19 = vadd.f32 %v1592_v18, %v1591_v13  ;;  %v1530_v20 = vpop.f32.mrf.mxu0 }
  0xf7   : > { %v1594_v21 = vpop.f32.mrf.mxu1 }
  0xf8   : > { %v874_v23 = vadd.f32 %v1593_v19, %v1529_v17  ;;  %v1531_v24 = vpop.f32.mrf.mxu0 }
  0xf9   : > { %v1595_v25 = vpop.f32.mrf.mxu1  ;;  %v1532_v29 = vadd.f32 %v1531_v24, %v1530_v20 }
  0xfa   : > { %v1533_v26 = vpop.f32.mrf.mxu0  ;;  %v984_v27 = vpack.c.bf16 %v874_v23, %v871_v22  ;;  %v1596_v30 = vadd.f32 %v1595_v25, %v1594_v21 }
  0xfb   : > { %v1597_v28 = vpop.f32.mrf.mxu1 }
  0xfc   : > { %1668 = vmatprep.mubr.bf16.mxu0 %v984_v27  ;;  %v1534_v31 = vpop.f32.mrf.mxu0  ;;  %v879_v37 = vadd.f32 %v1596_v30, %v1532_v29 }
  0xfd   : > { %v1535_v32 = vadd.f32 %v1534_v31, %v1533_v26  ;;  %v1598_v33 = vpop.f32.mrf.mxu1 }
  0xfe   : > { %v1599_v34 = vadd.f32 %v1598_v33, %v1597_v28  ;;  %v1536_v35 = vpop.f32.mrf.mxu0 }
  0xff   : > { %v1600_v36 = vpop.f32.mrf.mxu1 }
 0x100   : > { %v882_v38 = vadd.f32 %v1599_v34, %v1535_v32  ;;  %v1537_v39 = vpop.f32.mrf.mxu0 }
 0x101   : > { %v1601_v40 = vpop.f32.mrf.mxu1  ;;  %v1538_v44 = vadd.f32 %v1537_v39, %v1536_v35 }
 0x102   : > { %v985_v41 = vpack.c.bf16 %v882_v38, %v879_v37  ;;  %v1539_v42 = vpop.f32.mrf.mxu0  ;;  %v1602_v45 = vadd.f32 %v1601_v40, %v1600_v36 }
 0x103   : > { %v1603_v43 = vpop.f32.mrf.mxu1 }
 0x104   : > { %1669 = vmatmul.mubr.bf16.vlgmr.msra.gmra.mxu0 %v985_v41  ;;  %v1540_v46 = vpop.f32.mrf.mxu0  ;;  %v887_v52 = vadd.f32 %v1602_v45, %v1538_v44 }
 0x105   : > { %v1541_v47 = vadd.f32 %v1540_v46, %v1539_v42  ;;  %v1604_v48 = vpop.f32.mrf.mxu1 }
 0x106   : > { %v1605_v49 = vadd.f32 %v1604_v48, %v1603_v43  ;;  %v1542_v50 = vpop.f32.mrf.mxu0 }
 0x107   : > { %v1606_v51 = vpop.f32.mrf.mxu1 }
 0x108   : > { %v890_v53 = vadd.f32 %v1605_v49, %v1541_v47  ;;  %v1543_v54 = vpop.f32.mrf.mxu0 }
 0x109   : > { %v1607_v55 = vpop.f32.mrf.mxu1  ;;  %v1544_v59 = vadd.f32 %v1543_v54, %v1542_v50 }
 0x10a   : > { %v1545_v56 = vpop.f32.mrf.mxu0  ;;  %v986_v57 = vpack.c.bf16 %v890_v53, %v887_v52  ;;  %v1608_v60 = vadd.f32 %v1607_v55, %v1606_v51 }
 0x10b   : > { %v1609_v58 = vpop.f32.mrf.mxu1 }
 0x10c   : > { %1672 = vmatprep.mubr.bf16.mxu0 %v986_v57  ;;  %v1546_v61 = vpop.f32.mrf.mxu0  ;;  %v895_v3 = vadd.f32 %v1608_v60, %v1544_v59 }
 0x10d   : > { %v1547_v62 = vadd.f32 %v1546_v61, %v1545_v56  ;;  %v1610_v63 = vpop.f32.mrf.mxu1 }
 0x10e   : > { %v1611_v0 = vadd.f32 %v1610_v63, %v1609_v58  ;;  %v1548_v1 = vpop.f32.mrf.mxu0 }
 0x10f   : > { %v1612_v2 = vpop.f32.mrf.mxu1 }
 0x110   : > { %v898_v4 = vadd.f32 %v1611_v0, %v1547_v62  ;;  %v1549_v5 = vpop.f32.mrf.mxu0 }
 0x111   : > { %v1613_v6 = vpop.f32.mrf.mxu1  ;;  %v1550_v10 = vadd.f32 %v1549_v5, %v1548_v1  ;;  %v1417_v1 = vld [vmem:[%s2071_s3] ss:$0 sm:$0xff] }
 0x112   : > { %v1551_v7 = vpop.f32.mrf.mxu0  ;;  %v987_v8 = vpack.c.bf16 %v898_v4, %v895_v3  ;;  %v1614_v11 = vadd.f32 %v1613_v6, %v1612_v2 }
 0x113   : > { %v1615_v9 = vpop.f32.mrf.mxu1 }
 0x114   : > { %1673 = vmatmul.mubr.bf16.gmra.mxu0 %v987_v8  ;;  %v1552_v12 = vpop.f32.mrf.mxu0  ;;  %v903_v18 = vadd.f32 %v1614_v11, %v1550_v10 }
 0x115   : > { %v1553_v13 = vadd.f32 %v1552_v12, %v1551_v7  ;;  %v1616_v14 = vpop.f32.mrf.mxu1 }
 0x116   : > { %v1617_v15 = vadd.f32 %v1616_v14, %v1615_v9  ;;  %v1554_v16 = vpop.f32.mrf.mxu0 }
 0x117   : > { %v1618_v17 = vpop.f32.mrf.mxu1 }
 0x118   : > { %v906_v19 = vadd.f32 %v1617_v15, %v1553_v13  ;;  %v1555_v20 = vpop.f32.mrf.mxu0 }
 0x119   : > { %v1619_v21 = vpop.f32.mrf.mxu1  ;;  %v1556_v25 = vadd.f32 %v1555_v20, %v1554_v16 }
 0x11a   : > { %v1557_v22 = vpop.f32.mrf.mxu0  ;;  %v988_v23 = vpack.c.bf16 %v906_v19, %v903_v18  ;;  %v1620_v26 = vadd.f32 %v1619_v21, %v1618_v17 }
 0x11b   : > { %v1621_v24 = vpop.f32.mrf.mxu1 }
 0x11c   : > { %1676 = vmatprep.mubr.bf16.mxu1 %v988_v23  ;;  %v1558_v27 = vpop.f32.mrf.mxu0  ;;  %v911_v33 = vadd.f32 %v1620_v26, %v1556_v25 }
 0x11d   : > { %v1559_v28 = vadd.f32 %v1558_v27, %v1557_v22  ;;  %v1622_v29 = vpop.f32.mrf.mxu1 }
 0x11e   : > { %v1623_v30 = vadd.f32 %v1622_v29, %v1621_v24  ;;  %v1560_v31 = vpop.f32.mrf.mxu0 }
 0x11f   : > { %v1624_v32 = vpop.f32.mrf.mxu1 }
 0x120   : > { %v914_v34 = vadd.f32 %v1623_v30, %v1559_v28  ;;  %v1561_v35 = vpop.f32.mrf.mxu0 }
 0x121   : > { %v1625_v36 = vpop.f32.mrf.mxu1  ;;  %v1562_v40 = vadd.f32 %v1561_v35, %v1560_v31 }
 0x122   : > { %v989_v37 = vpack.c.bf16 %v914_v34, %v911_v33  ;;  %v1563_v38 = vpop.f32.mrf.mxu0  ;;  %v1626_v41 = vadd.f32 %v1625_v36, %v1624_v32 }
 0x123   : > { %v1627_v39 = vpop.f32.mrf.mxu1 }
 0x124   : > { %1677 = vmatmul.mubr.bf16.vlgmr.msra.gmra.mxu1 %v989_v37  ;;  %v1564_v42 = vpop.f32.mrf.mxu0  ;;  %v919_v48 = vadd.f32 %v1626_v41, %v1562_v40 }
 0x125   : > { %v1565_v43 = vadd.f32 %v1564_v42, %v1563_v38  ;;  %v1628_v44 = vpop.f32.mrf.mxu1 }
 0x126   : > { %v1629_v45 = vadd.f32 %v1628_v44, %v1627_v39  ;;  %v1566_v46 = vpop.f32.mrf.mxu0 }
 0x127   : > { %v1630_v47 = vpop.f32.mrf.mxu1 }
 0x128   : > { %v922_v49 = vadd.f32 %v1629_v45, %v1565_v43  ;;  %v1567_v50 = vpop.f32.mrf.mxu0 }
 0x129   : > { %v1631_v51 = vpop.f32.mrf.mxu1  ;;  %v1568_v55 = vadd.f32 %v1567_v50, %v1566_v46 }
 0x12a   : > { %v1569_v52 = vpop.f32.mrf.mxu0  ;;  %v990_v53 = vpack.c.bf16 %v922_v49, %v919_v48  ;;  %v1632_v56 = vadd.f32 %v1631_v51, %v1630_v47 }
 0x12b   : > { %v1633_v54 = vpop.f32.mrf.mxu1 }
 0x12c   : > { %1680 = vmatprep.mubr.bf16.mxu1 %v990_v53  ;;  %v1570_v57 = vpop.f32.mrf.mxu0  ;;  %v927_v61 = vadd.f32 %v1632_v56, %v1568_v55 }
 0x12d   : > { %v1571_v58 = vadd.f32 %v1570_v57, %v1569_v52  ;;  %v1634_v59 = vpop.f32.mrf.mxu1 }
 0x12e   : > { %v1635_v60 = vadd.f32 %v1634_v59, %v1633_v54 }
 0x130   : > { %v930_v62 = vadd.f32 %v1635_v60, %v1571_v58 }
 0x132   : > { %v991_v63 = vpack.c.bf16 %v930_v62, %v927_v61 }
 0x134   : > { %1681 = vmatmul.mubr.bf16.gmra.mxu1 %v991_v63 }
 0x1c4   : > { %v1670_v0 = vpop.f32.mrf.mxu0 }
 0x1c5   : > { %v1106_v3 = vadd.f32 %v1670_v0, %v1417_v1 }
 0x1c6   : > { %v1097_v2 = vpop.f32.mrf.mxu0 }
 0x1c7   : > { %v1098_v5 = vadd.f32 %v1417_v1, %v1097_v2  ;;  %v1162_v8 = vmax.f32 %v1106_v3, 0.0 }
 0x1c8   : > { %v1671_v4 = vpop.f32.mrf.mxu0 }
 0x1c9   : > { %v1109_v6 = vadd.f32 %v1671_v4, %v1417_v1  ;;  %v1160_v11 = vmax.f32 %v1098_v5, 0.0 }
 0x1ca   : > { %v1100_v7 = vpop.f32.mrf.mxu0 }
 0x1cb   : > { %v1163_v9 = vmax.f32 %v1109_v6, 0.0  ;;  %v1101_v10 = vadd.f32 %v1417_v1, %v1100_v7 }
 0x1cd   : > { %v1469_v12 = vpack.c.bf16 %v1163_v9, %v1162_v8  ;;  %v1161_v13 = vmax.f32 %v1101_v10, 0.0 }
 0x1cf   : > { %1501 = vst [vmem:[%s2049_s20 + $0x8] sm:$0xff] %v1469_v12   ;;  %v1464_v14 = vpack.c.bf16 %v1161_v13, %v1160_v11 }
 0x1d1   : > { %1465 = vst [vmem:[%s2049_s20] sm:$0xff] %v1464_v14  }
 0x1d4   : > { %v1674_v15 = vpop.f32.mrf.mxu0 }
 0x1d5   : > { %v1122_v17 = vadd.f32 %v1674_v15, %v1417_v1 }
 0x1d6   : > { %v1113_v16 = vpop.f32.mrf.mxu0 }
 0x1d7   : > { %v1114_v19 = vadd.f32 %v1417_v1, %v1113_v16  ;;  %v1166_v22 = vmax.f32 %v1122_v17, 0.0 }
 0x1d8   : > { %v1675_v18 = vpop.f32.mrf.mxu0 }
 0x1d9   : > { %v1125_v20 = vadd.f32 %v1675_v18, %v1417_v1  ;;  %v1164_v25 = vmax.f32 %v1114_v19, 0.0 }
 0x1da   : > { %v1116_v21 = vpop.f32.mrf.mxu0 }
 0x1db   : > { %v1167_v23 = vmax.f32 %v1125_v20, 0.0  ;;  %v1117_v24 = vadd.f32 %v1417_v1, %v1116_v21 }
 0x1dd   : > { %v1479_v26 = vpack.c.bf16 %v1167_v23, %v1166_v22  ;;  %v1165_v27 = vmax.f32 %v1117_v24, 0.0 }
 0x1df   : > { %1503 = vst [vmem:[%s2049_s20 + $0x18] sm:$0xff] %v1479_v26   ;;  %v1474_v28 = vpack.c.bf16 %v1165_v27, %v1164_v25 }
 0x1e1   : > { %1502 = vst [vmem:[%s2049_s20 + $0x10] sm:$0xff] %v1474_v28  }
 0x1e4   : > { %v1678_v29 = vpop.f32.mrf.mxu1 }
 0x1e5   : > { %v1138_v31 = vadd.f32 %v1678_v29, %v1417_v1 }
 0x1e6   : > { %v1129_v30 = vpop.f32.mrf.mxu1 }
 0x1e7   : > { %v1130_v33 = vadd.f32 %v1417_v1, %v1129_v30  ;;  %v1170_v36 = vmax.f32 %v1138_v31, 0.0 }
 0x1e8   : > { %v1679_v32 = vpop.f32.mrf.mxu1 }
 0x1e9   : > { %v1141_v34 = vadd.f32 %v1679_v32, %v1417_v1  ;;  %v1168_v39 = vmax.f32 %v1130_v33, 0.0 }
 0x1ea   : > { %v1132_v35 = vpop.f32.mrf.mxu1 }
 0x1eb   : > { %v1171_v37 = vmax.f32 %v1141_v34, 0.0  ;;  %v1133_v38 = vadd.f32 %v1417_v1, %v1132_v35 }
 0x1ed   : > { %v1489_v40 = vpack.c.bf16 %v1171_v37, %v1170_v36  ;;  %v1169_v41 = vmax.f32 %v1133_v38, 0.0 }
 0x1ef   : > { %1505 = vst [vmem:[%s2049_s20 + $0x28] sm:$0xff] %v1489_v40   ;;  %v1484_v42 = vpack.c.bf16 %v1169_v41, %v1168_v39 }
 0x1f1   : > { %1504 = vst [vmem:[%s2049_s20 + $0x20] sm:$0xff] %v1484_v42  }
 0x1f4   : > { %v1682_v43 = vpop.f32.mrf.mxu1 }
 0x1f5   : > { %v1154_v45 = vadd.f32 %v1682_v43, %v1417_v1 }
 0x1f6   : > { %v1145_v44 = vpop.f32.mrf.mxu1 }
 0x1f7   : > { %v1146_v47 = vadd.f32 %v1417_v1, %v1145_v44  ;;  %v1174_v50 = vmax.f32 %v1154_v45, 0.0 }
 0x1f8   : > { %v1683_v46 = vpop.f32.mrf.mxu1 }
 0x1f9   : > { %v1157_v48 = vadd.f32 %v1683_v46, %v1417_v1  ;;  %v1172_v53 = vmax.f32 %v1146_v47, 0.0 }
 0x1fa   : > { %v1148_v49 = vpop.f32.mrf.mxu1 }
 0x1fb   : > { %v1175_v51 = vmax.f32 %v1157_v48, 0.0  ;;  %v1149_v52 = vadd.f32 %v1417_v1, %v1148_v49 }
 0x1fd   : > { %v1499_v54 = vpack.c.bf16 %v1175_v51, %v1174_v50  ;;  %v1173_v55 = vmax.f32 %v1149_v52, 0.0 }
 0x1ff   : > { %1507 = vst [vmem:[%s2049_s20 + $0x38] sm:$0xff] %v1499_v54   ;;  %v1494_v56 = vpack.c.bf16 %v1173_v55, %v1172_v53 }
 0x201   : > { %1506 = vst [vmem:[%s2049_s20 + $0x30] sm:$0xff] %v1494_v56  }
 0x202 PF: > { %s14_s17 = sadd.s32 1, %s1834_s17   ;;  %s2073_s15 = smov %s1830_s16 }
 0x203   : > { %p11_p5 = scmp.ge.s32.totalorder %s14_s17, 6   ;;  %s2074_s16 = smov %s2076_s18 }
 0x205   :  { %13 = sbr.rel (!%p11_p5) target bundleno = 2 (0x2), region = 77 }

// kernel: _forward_padded.7
= control target key start
LH: loop header
LB: loop body
LE: loop exit
PB: predicated region body
PF: predicated region fallthrough
CT: control target
= control target key end

     0   :  { %8 = vsyncpa [#allocation3], 0  ;;  %s894_s0 = inlined_call_operand.vmem [shape: bf16[512,128], index: 0, kind: input, shape index: {}]   ;;  %s895_s1 = inlined_call_operand.vmem [shape: bf16[128,128], index: 1, kind: input, shape index: {}]   ;;  %s896_s2 = inlined_call_operand.vmem [shape: f32[1,128], index: 2, kind: input, shape index: {}]   ;;  %s897_s3 = inlined_call_operand.hbm [shape: f32[512,128], index: 3, kind: output, shape index: {}]  }
   0x1   :  { %10 = vsyncpa [#allocation3 + $0x1], 0  ;;  %s733_s12 = smov 0   ;;  %s735_s13 = smov 0  }
   0x2   :  { %s737_s14 = smov 0   ;;  %s739_s15 = smov 0  }
   0x3 LB: > { %s754_s16 = sadd.s32 4294967295, %s708_s15   ;;  %s497_s17 = sadd.s32 4294967294, %s708_s15   ;;  %s708_s15 = sphi %s739_s15, %s903_s15   ;;  %s704_s14 = sphi %s737_s14, %s902_s14   ;;  %s700_s13 = sphi %s735_s13, %s901_s13   ;;  %s696_s12 = sphi %s733_s12, %s900_s12  }
   0x4   : > { %s758_s18 = sadd.s32 1, %s708_s15   ;;  %s91_s19 = sadd.s32 1, %s704_s14 }
   0x5   : > { %s88_s20 = ssub.s32 %s708_s15, %s758_s18  ;;  %p101_p0 = scmp.ne.s32.totalorder %s704_s14, %s700_s13 }
   0x6   : > { %p89_p1 = scmp.eq.s32.totalorder %s88_s20, 0  ;;  %p102_p2 = scmp.eq.s32.totalorder %s754_s16, 3 }
   0x7   : > { %p107_p3 = scmp.ne.s32.totalorder %s700_s13, %s696_s12  ;;  %p108_p4 = scmp.eq.s32.totalorder %s497_s17, 3 }
   0x8   : > { %s769_s21 = scalar_select %p89_p1, %s704_s14, %s91_s19  }
   0x9   : > { %p771_p5 = por %p102_p2, %p101_p0  ;;  %p775_p6 = por %p108_p4, %p107_p3 }
   0xa   : > { %p500_p7 = scmp.ge.s32.totalorder %s708_s15, 1  ;;  %p141_p8 = scmp.lt.s32.totalorder %s708_s15, 5 }
   0xc   : > { %p142_p9 = pnand %p500_p7, %p141_p8 }
   0xd   : > { %s502_s26 = sshll.u32 (!%p142_p9), %s754_s16, 4  ;;  %s162_s27 = sand.u32 (!%p142_p9), 1, %s700_s13  }
   0xe   : > { %145 = sbr.rel (%p142_p9) target bundleno = 275 (0x113), region = 32  ;;  %p166_p10 = scmp.lt.s32.totalorder (!%p142_p9), %s502_s26, 63 }
   0xf   : > { %s501_s28 = sshll.u32 (!%p142_p9), %s162_s27, 7  ;;  %s526_s5 = sshll.u32 (!%p142_p9), %s754_s16, 11 }
  0x10   : > { %s844_s9 = scalar_lea.hbm (!%p142_p9), %s897_s3, %s526_s5  ;;  %s854_s16 = scalar_lea.sflag (!%p142_p9), [#allocation3], %s162_s27 }
  0x11   : > { %s710_s11 = smov (!%p142_p9), [#allocation2]  }
  0x12   : > { %s652_s17 = sshll.u32 (!%p142_p9), %s710_s11, 4  ;;  %s653_s17 = int_to_ptr.vmem [resolvable:$false] %s652_s17 }
  0x13   : > { %v632_v0 = vld [vmem:[%s895_s1 + $0x38] sm:$0xff]   ;;  %v633_v1 = vld [vmem:[%s895_s1 + $0x30] sm:$0xff]   ;;  %s905_s26 = smov (!%p166_p10, %s502_s26), 63  ;;  %v634_v2 = vld [vmem:[%s895_s1 + $0x28] sm:$0xff]   ;;  %s654_s19 = scalar_lea.vmem %s653_s17, 4096 }
  0x14   : > { %543 = vmatprep.subr.bf16.mxu0 %v632_v0  ;;  %575 = vmatprep.subr.bf16.mxu1 %v632_v0  ;;  %s503_s4 = sshll.u32 %s905_s26, 2  ;;  %v635_v3 = vld [vmem:[%s895_s1 + $0x20] sm:$0xff]   ;;  %v636_v6 = vld [vmem:[%s895_s1 + $0x18] sm:$0xff]   ;;  %v637_v7 = vld [vmem:[%s895_s1 + $0x10] sm:$0xff]  }
  0x15   : > { %544 = vmatpush3.bf16.msra.mxu0 %v632_v0  ;;  %583 = vmatpush3.bf16.msra.mxu1 %v632_v0  ;;  %s794_s7 = scalar_lea.vmem %s894_s0, %s503_s4  ;;  %v638_v8 = vld [vmem:[%s895_s1 + $0x8] sm:$0xff]   ;;  %v639_v9 = vld [vmem:[%s895_s1] sm:$0xff]   ;;  %s825_s4 = scalar_lea.vmem [#allocation2], %s501_s28 }
  0x16   : > { %545 = vmatprep.subr.bf16.mxu0 %v633_v1  ;;  %576 = vmatprep.subr.bf16.mxu1 %v633_v1  ;;  %v640_v4 = vld [vmem:[%s794_s7] sm:$0xff]   ;;  %v642_v10 = vld [vmem:[%s794_s7 + $0x8] sm:$0xff]   ;;  %v644_v12 = vld [vmem:[%s794_s7 + $0x10] sm:$0xff]   ;;  %s435_s6 = sshll.u32 %s825_s4, 4  ;;  %s846_s6 = int_to_ptr.vmem [resolvable:$true] %s435_s6 }
  0x17   : > { %v641_v5 = vld [vmem:[%s794_s7 + $0x20] sm:$0xff]   ;;  %559 = vmatprep.mubr.bf16.mxu0 %v640_v4  ;;  %v643_v11 = vld [vmem:[%s794_s7 + $0x28] sm:$0xff]   ;;  %v645_v13 = vld [vmem:[%s794_s7 + $0x30] sm:$0xff]   ;;  %s648_s10 = scalar_lea.vmem %s846_s6, 2048  ;;  %p655_p0 = scmp.lt.s32.totalorder %s846_s6, %s653_s17 }
  0x18   : > { %567 = vmatprep.mubr.bf16.mxu1 %v641_v5  ;;  %v646_v14 = vld [vmem:[%s794_s7 + $0x18] sm:$0xff]   ;;  %v504_v16 = vld [vmem:[%s896_s2] ss:$0 sm:$0xff]  ;;  %p649_p11 = scmp.ne.s32.totalorder %s846_s6, %s648_s10  ;;  %p656_p1 = scmp.lt.s32.totalorder %s654_s19, %s648_s10 }
  0x19   : > { %546 = vmatpush3.bf16.msra.mxu0 %v633_v1  ;;  %584 = vmatpush3.bf16.msra.mxu1 %v633_v1  ;;  %v647_v15 = vld [vmem:[%s794_s7 + $0x38] sm:$0xff]  }
  0x1a   : > { %547 = vmatprep.subr.bf16.mxu0 %v634_v2  ;;  %577 = vmatprep.subr.bf16.mxu1 %v634_v2  ;;  %p650_p12 = pnand %p649_p11, %p771_p5  ;;  %p657_p2 = por %p656_p1, %p655_p0 }
  0x1c   : > { %p651_p13 = pneg %p650_p12 }
  0x1d   : > { %548 = vmatpush3.bf16.msra.mxu0 %v634_v2  ;;  %585 = vmatpush3.bf16.msra.mxu1 %v634_v2 }
  0x1e   : > { %549 = vmatprep.subr.bf16.mxu0 %v635_v3  ;;  %578 = vmatprep.subr.bf16.mxu1 %v635_v3  ;;  %p658_p3 = pnand %p657_p2, %p651_p13 }
  0x21   : > { %550 = vmatpush3.bf16.msra.mxu0 %v635_v3  ;;  %586 = vmatpush3.bf16.msra.mxu1 %v635_v3 }
  0x22   : > { %551 = vmatprep.subr.bf16.mxu0 %v636_v6  ;;  %579 = vmatprep.subr.bf16.mxu1 %v636_v6 }
  0x25   : > { %552 = vmatpush3.bf16.msra.mxu0 %v636_v6  ;;  %587 = vmatpush3.bf16.msra.mxu1 %v636_v6 }
  0x26   : > { %553 = vmatprep.subr.bf16.mxu0 %v637_v7  ;;  %580 = vmatprep.subr.bf16.mxu1 %v637_v7 }
  0x29   : > { %554 = vmatpush3.bf16.msra.mxu0 %v637_v7  ;;  %588 = vmatpush3.bf16.msra.mxu1 %v637_v7 }
  0x2a   : > { %555 = vmatprep.subr.bf16.mxu0 %v638_v8  ;;  %581 = vmatprep.subr.bf16.mxu1 %v638_v8 }
  0x2d   : > { %556 = vmatpush3.bf16.msra.mxu0 %v638_v8  ;;  %589 = vmatpush3.bf16.msra.mxu1 %v638_v8 }
  0x2e   : > { %557 = vmatprep.subr.bf16.mxu0 %v639_v9  ;;  %582 = vmatprep.subr.bf16.mxu1 %v639_v9 }
  0x31   : > { %558 = vmatpush3.bf16.msra.mxu0 %v639_v9  ;;  %590 = vmatpush3.bf16.msra.mxu1 %v639_v9 }
  0x34   : > { %560 = vmatmul.mubr.bf16.vlgmr.msra.gmra.mxu0 %v642_v10  ;;  %568 = vmatmul.mubr.bf16.vlgmr.msra.gmra.mxu1 %v643_v11 }
  0x35   : > { %563 = vmatprep.mubr.bf16.mxu0 %v644_v12  ;;  %571 = vmatprep.mubr.bf16.mxu1 %v645_v13 }
  0x3c   : > { %564 = vmatmul.mubr.bf16.gmra.mxu0 %v646_v14  ;;  %572 = vmatmul.mubr.bf16.gmra.mxu1 %v647_v15 }
  0xf4   : > { %v561_v17 = vpop.f32.mrf.mxu0  ;;  %v569_v18 = vpop.f32.mrf.mxu1 }
  0xf5   : > { %v351_v19 = vadd.f32 %v561_v17, %v504_v16  ;;  %v383_v20 = vadd.f32 %v569_v18, %v504_v16 }
  0xf6   : > { %v342_v21 = vpop.f32.mrf.mxu0  ;;  %v374_v22 = vpop.f32.mrf.mxu1 }
  0xf7   : > { %407 = vst [vmem:[%s825_s4 + $0x10] sm:$0xff] %v351_v19  ;;  %415 = vst [vmem:[%s825_s4 + $0x50] sm:$0xff] %v383_v20  ;;  %v343_v23 = vadd.f32 %v504_v16, %v342_v21  ;;  %v375_v24 = vadd.f32 %v504_v16, %v374_v22 }
  0xf8   : > { %v562_v25 = vpop.f32.mrf.mxu0  ;;  %v570_v26 = vpop.f32.mrf.mxu1 }
  0xf9   : > { %405 = vst [vmem:[%s825_s4] sm:$0xff] %v343_v23  ;;  %413 = vst [vmem:[%s825_s4 + $0x40] sm:$0xff] %v375_v24  ;;  %v354_v27 = vadd.f32 %v562_v25, %v504_v16  ;;  %v386_v28 = vadd.f32 %v570_v26, %v504_v16 }
  0xfa   : > { %v345_v29 = vpop.f32.mrf.mxu0  ;;  %v377_v30 = vpop.f32.mrf.mxu1 }
  0xfb   : > { %408 = vst [vmem:[%s825_s4 + $0x18] sm:$0xff] %v354_v27  ;;  %416 = vst [vmem:[%s825_s4 + $0x58] sm:$0xff] %v386_v28  ;;  %v346_v31 = vadd.f32 %v504_v16, %v345_v29  ;;  %v378_v32 = vadd.f32 %v504_v16, %v377_v30 }
  0xfc   : > { %v565_v33 = vpop.f32.mrf.mxu0  ;;  %v573_v34 = vpop.f32.mrf.mxu1 }
  0xfd   : > { %406 = vst [vmem:[%s825_s4 + $0x8] sm:$0xff] %v346_v31  ;;  %414 = vst [vmem:[%s825_s4 + $0x48] sm:$0xff] %v378_v32  ;;  %v367_v35 = vadd.f32 %v565_v33, %v504_v16  ;;  %v399_v36 = vadd.f32 %v573_v34, %v504_v16 }
  0xfe   : > { %v358_v37 = vpop.f32.mrf.mxu0  ;;  %v390_v38 = vpop.f32.mrf.mxu1 }
  0xff   : > { %411 = vst [vmem:[%s825_s4 + $0x30] sm:$0xff] %v367_v35  ;;  %419 = vst [vmem:[%s825_s4 + $0x70] sm:$0xff] %v399_v36  ;;  %v359_v39 = vadd.f32 %v504_v16, %v358_v37  ;;  %v391_v40 = vadd.f32 %v504_v16, %v390_v38 }
 0x100   : > { %v566_v41 = vpop.f32.mrf.mxu0  ;;  %v574_v42 = vpop.f32.mrf.mxu1 }
 0x101   : > { %409 = vst [vmem:[%s825_s4 + $0x20] sm:$0xff] %v359_v39  ;;  %417 = vst [vmem:[%s825_s4 + $0x60] sm:$0xff] %v391_v40  ;;  %v370_v43 = vadd.f32 %v566_v41, %v504_v16  ;;  %v402_v44 = vadd.f32 %v574_v42, %v504_v16 }
 0x102   : > { %v361_v45 = vpop.f32.mrf.mxu0  ;;  %v393_v46 = vpop.f32.mrf.mxu1 }
 0x103   : > { %412 = vst [vmem:[%s825_s4 + $0x38] sm:$0xff] %v370_v43  ;;  %420 = vst [vmem:[%s825_s4 + $0x78] sm:$0xff] %v402_v44  ;;  %v362_v47 = vadd.f32 %v504_v16, %v361_v45  ;;  %v394_v48 = vadd.f32 %v504_v16, %v393_v46 }
 0x105   : > { %410 = vst [vmem:[%s825_s4 + $0x28] sm:$0xff] %v362_v47  ;;  %418 = vst [vmem:[%s825_s4 + $0x68] sm:$0xff] %v394_v48 }
 0x106   : > { %661 = shalt.err (!%p658_p3)
}
 0x107   : > { %s662_s20 = scalar_lea.hbm %s844_s9, 2048  ;;  %s666_s26 = scalar_lea.hbm %s897_s3, 8192 }
 0x108   : > { %p663_p4 = scmp.ne.s32.totalorder %s844_s9, %s662_s20  ;;  %p667_p9 = scmp.lt.s32.totalorder %s844_s9, %s897_s3 }
 0x109   : > { %p668_p10 = scmp.lt.s32.totalorder %s666_s26, %s662_s20 }
 0x10a   : > { %p664_p7 = pnand %p663_p4, %p771_p5 }
 0x10b   : > { %p669_p11 = por %p668_p10, %p667_p9 }
 0x10c   : > { %p665_p8 = pneg %p664_p7 }
 0x10e   : > { %p670_p12 = pnand %p669_p11, %p665_p8 }
 0x110   : > { %673 = shalt.err (!%p670_p12)
}
 0x111   : > { %s711_s29 = smov 128   ;;  %s712_s30 = smov 8  }
 0x112   : > { %591 = dma.vmem_to_hbm [thread:$0]  (%p771_p5), %s846_s6, 2048, %s844_s9, %s854_s16, %s711_s29, %s711_s29, %s712_s30  }
 0x113 PF: > { %p597_p13 = scmp.ge.s32.totalorder %s708_s15, 2  ;;  %s450_s4 = sand.u32 1, %s696_s12  }
 0x114   : > { %s451_s5 = scalar_lea.sflag [#allocation3], %s450_s4 }
 0x115   : > { %p594_p0 = pnand %p597_p13, %p775_p6 }
 0x117   : > { %p595_p1 = pneg %p594_p0 }
 0x119   : > { %691 = dma.done.wait (%p595_p1), %s451_s5, 2048  }
 0x11a   : > { %693 = vsyncadd (%p595_p1), %s451_s5, 4294965248  ;;  %p13_p2 = scmp.ge.s32.totalorder %s758_s18, 6   ;;  %s900_s12 = smov %s700_s13 }
 0x11b   : > { %s901_s13 = smov %s704_s14  ;;  %s902_s14 = smov %s769_s21 }
 0x11c   : > { %s903_s15 = smov %s758_s18  ;;  %15 = sbr.rel (!%p13_p2) target bundleno = 3 (0x3), region = 67 }
 0x121   :  { %456 = vsyncpa [#allocation3], 1 }
 0x122   :  { %458 = vsyncpa [#allocation3 + $0x1], 1 }

</bundles_post_ra>
